<compile_context>
chip_gen: v7x
topology: tpu7x:2x2x1
jax: 0.10.0
libtpu: 0.0.40
codegen_flags: <defaults>
</compile_context>

<pallas_src>
import math

import jax
import jax.numpy as jnp
import numpy as np
from jax import lax
from jax.experimental import pallas as pl
from jax.experimental.pallas import tpu as pltpu

KERNEL = 3  # 3x3 convs, padding=1


# --------------------------------------------------------------------------
# Shared in-kernel helper: stride-1 3x3 conv (pad=1) on the ReLU'd activation,
# accumulated on top of `acc0` (shortcut + fused biases).  Per-tap matmuls:
# no 9x im2col copy of the activation is ever materialized.
# --------------------------------------------------------------------------
def _stride1_conv_add(y1, acc0, ws_ref, B, Ho, Wo, Cout):
    HW = Ho * Wo
    y1b = y1.reshape(B, Ho, Wo, Cout).astype(jnp.bfloat16)
    # zero-pad (padding=1) as a value: no scratch round-trip
    zrow = jnp.zeros((B, 1, Wo, Cout), jnp.bfloat16)
    ypad = jnp.concatenate([zrow, y1b, zrow], axis=1)           # (B, Ho+2, Wo, C)
    zcol = jnp.zeros((B, Ho + 2, 1, Cout), jnp.bfloat16)
    ypad = jnp.concatenate([zcol, ypad, zcol], axis=2)          # (B, Ho+2, Wo+2, C)

    acc = acc0                                                   # (B*HW, Cout) f32
    for kh in range(KERNEL):
        for kw in range(KERNEL):
            t = kh * KERNEL + kw
            tap = ypad[:, kh:kh + Ho, kw:kw + Wo, :].reshape(B * HW, Cout)
            acc = acc + jnp.dot(tap, ws_ref[t * Cout:(t + 1) * Cout, :],
                                preferred_element_type=jnp.float32)
    return acc


def _make_packed_kernel(Ho, Wo):
    """Small-Cin path: wrapper prepared a (B, HW, 9*Cin) im2col block; one
    packed MXU dot does conv1+conv2."""
    def kernel(xc_ref, w12_ref, b1_ref, ws_ref, bc_ref, out_ref):
        B, HW, Cout = out_ref.shape
        patch2 = xc_ref[...].reshape(B * HW, xc_ref.shape[-1])
        acc12 = jnp.dot(patch2, w12_ref[...],
                        preferred_element_type=jnp.float32)      # (B*HW, 2*Cout)
        y1 = jnp.maximum(acc12[:, :Cout] + b1_ref[...], 0.0)     # residual act
        acc0 = acc12[:, Cout:] + bc_ref[...]                     # shortcut + (b+b2)
        out = _stride1_conv_add(y1, acc0, ws_ref, B, Ho, Wo, Cout)
        out_ref[...] = out.reshape(B, HW, Cout).astype(out_ref.dtype)
    return kernel


def _make_pertap_kernel(Ho, Wo):
    """Large-Cin path: 2x2 parity-grid input; the 9 stride-2 taps are gathered
    as contiguous slices and accumulated per tap (no 9x input copy in VMEM)."""
    def kernel(g_ref, w12_ref, b1_ref, ws_ref, bc_ref, out_ref):
        B, HW, Cout = out_ref.shape
        Cin = g_ref.shape[-1]
        acc12 = jnp.zeros((B * HW, 2 * Cout), jnp.float32)
        for kh in range(KERNEL):
            for kw in range(KERNEL):
                t = kh * KERNEL + kw
                # tap(kh,kw)[b,i,j,:] = x_pad[b, 2i+kh, 2j+kw, :]
                tap = g_ref[:, kh % 2, kw % 2,
                            kh // 2:kh // 2 + Ho,
                            kw // 2:kw // 2 + Wo, :].reshape(B * HW, Cin)
                acc12 = acc12 + jnp.dot(tap, w12_ref[t * Cin:(t + 1) * Cin, :],
                                        preferred_element_type=jnp.float32)
        y1 = jnp.maximum(acc12[:, :Cout] + b1_ref[...], 0.0)
        acc0 = acc12[:, Cout:] + bc_ref[...]
        out = _stride1_conv_add(y1, acc0, ws_ref, B, Ho, Wo, Cout)
        out_ref[...] = out.reshape(B, HW, Cout).astype(out_ref.dtype)
    return kernel


# --------------------------------------------------------------------------
# Wrapper
# --------------------------------------------------------------------------
def dblock_forward(x_nchw, params, *, batch_block=1, per_tap_input=None,
                   out_dtype=jnp.float32, vmem_limit_bytes=64 * 1024 * 1024):
    """OptimizedD_Block.forward. Input/output in NCHW like PyTorch."""
    w1, b1, w, b, w2, b2 = params          # OIHW weights, (Cout,) biases
    N, Cin, H, W = x_nchw.shape
    Cout = w1.shape[0]
    assert H % 2 == 0 and W % 2 == 0, "even spatial dims required"
    assert N % batch_block == 0
    Ho, Wo = H // 2, W // 2
    HW = Ho * Wo
    B = batch_block
    if per_tap_input is None:
        per_tap_input = Cin >= 64   # large Cin: per-tap; tiny Cin: pack lanes

    x = jnp.transpose(x_nchw, (0, 2, 3, 1))                     # NHWC
    xp = jnp.pad(x, ((0, 0), (1, 1), (1, 1), (0, 0)))

    if per_tap_input:
        # 2x2 space-to-depth parity grids: same byte count as the input; the 9
        # stride-2 taps become contiguous in-kernel slices.
        g = jnp.stack(
            [jnp.stack([xp[:, ph::2, pw::2, :] for pw in range(2)], axis=1)
             for ph in range(2)], axis=1).astype(jnp.bfloat16)  # (N,2,2,Hh,Wh,Cin)
        in0 = g
        in0_spec = pl.BlockSpec((B, 2, 2, Ho + 1, Wo + 1, Cin),
                                lambda n: (n, 0, 0, 0, 0, 0))
        kernel = _make_pertap_kernel(Ho, Wo)
    else:
        # First-layer tiny Cin: 9*Cin-lane im2col in the wrapper (9x of a tiny
        # input) so VMEM tiles are not ~Cin/128 lane-padded.
        cols = [xp[:, kh:kh + 2 * Ho:2, kw:kw + 2 * Wo:2, :]
                for kh in range(KERNEL) for kw in range(KERNEL)]
        in0 = jnp.concatenate(cols, axis=-1).reshape(
            N, HW, KERNEL * KERNEL * Cin).astype(jnp.bfloat16)
        in0_spec = pl.BlockSpec((B, HW, KERNEL * KERNEL * Cin),
                                lambda n: (n, 0, 0))
        kernel = _make_packed_kernel(Ho, Wo)

    # weights as HWIO-flattened matmul operands; row index = kh*3*Ci + kw*Ci + ci
    def to_mat(wt):
        return jnp.transpose(wt, (2, 3, 1, 0)).reshape(-1, wt.shape[0])

    w12 = jnp.concatenate([to_mat(w1), to_mat(w2)], axis=1).astype(jnp.bfloat16)
    ws = to_mat(w).astype(jnp.bfloat16)
    b1r = b1.reshape(1, -1).astype(jnp.float32)
    bcr = (b + b2).reshape(1, -1).astype(jnp.float32)           # fused b + b2

    def const_spec(a):   # constant index_map -> single-buffer (saves VMEM)
        return pl.BlockSpec(a.shape, lambda n: (0,) * a.ndim,
                            pipeline_mode=pl.Buffered(buffer_count=1))

    grid_spec = pltpu.PrefetchScalarGridSpec(
        num_scalar_prefetch=0,
        grid=(N // B,),    # keep >= 2 steps so both v7x TensorCores stay busy
        in_specs=[in0_spec, const_spec(w12), const_spec(b1r),
                  const_spec(ws), const_spec(bcr)],
        out_specs=pl.BlockSpec((B, HW, Cout), lambda n: (n, 0, 0)),
    )

    flops = 2 * N * HW * (9 * Cin * 2 * Cout + 9 * Cout * Cout)
    out_bytes = N * HW * Cout * jnp.dtype(out_dtype).itemsize
    bytes_accessed = (in0.size * 2 + w12.size * 2 + ws.size * 2
                      + (b1r.size + bcr.size) * 4 + out_bytes)

    out_flat = pl.pallas_call(
        kernel,
        out_shape=jax.ShapeDtypeStruct((N, HW, Cout), out_dtype),
        grid_spec=grid_spec,
        compiler_params=pltpu.CompilerParams(
            dimension_semantics=("parallel",),
            vmem_limit_bytes=vmem_limit_bytes),
        cost_estimate=pl.CostEstimate(flops=flops, transcendentals=0,
                                      bytes_accessed=bytes_accessed),
    )(in0, w12, b1r, ws, bcr)

    # Cheap wrapper-side HBM layout op; kernel store stays a plain vst stream.
    return jnp.transpose(out_flat.reshape(N, Ho, Wo, Cout), (0, 3, 1, 2))


# ---------------- deterministic parameter setup (synthetic) ----------------
def init_params(key, in_channels, out_channels):
    k1, k2, k3, kb1, kb2, kb3, ku1, ku2, ku3 = jax.random.split(key, 9)

    def xavier(k, cout, cin):
        fan_in, fan_out = cin * KERNEL * KERNEL, cout * KERNEL * KERNEL
        bound = math.sqrt(6.0 / (fan_in + fan_out))
        return jax.random.uniform(k, (cout, cin, KERNEL, KERNEL),
                                  jnp.float32, -bound, bound)

    def bias_init(k, cout, cin):
        bound = 1.0 / math.sqrt(cin * KERNEL * KERNEL)
        return jax.random.uniform(k, (cout,), jnp.float32, -bound, bound)

    def spec_norm(wt, k, n_iter=10):
        # spectral_norm at parameter setup: divide the (Cout, Cin*K*K)-viewed
        # weight by its top singular value (power iteration).
        cout = wt.shape[0]
        wm = wt.reshape(cout, -1)
        u = jax.random.normal(k, (cout,), jnp.float32)
        u = u / (jnp.linalg.norm(u) + 1e-12)
        v = None
        for _ in range(n_iter):
            v = wm.T @ u
            v = v / (jnp.linalg.norm(v) + 1e-12)
            u = wm @ v
            u = u / (jnp.linalg.norm(u) + 1e-12)
        sigma = u @ (wm @ v)
        return wt / sigma

    w1 = spec_norm(xavier(k1, out_channels, in_channels), ku1)
    w = spec_norm(xavier(k2, out_channels, out_channels), ku2)
    w2 = spec_norm(xavier(k3, out_channels, in_channels), ku3)
    b1 = bias_init(kb1, out_channels, in_channels)
    b = bias_init(kb2, out_channels, out_channels)
    b2 = bias_init(kb3, out_channels, in_channels)
    return (w1, b1, w, b, w2, b2)


# ---------------- pure-JAX reference (for correctness check) ----------------
def reference_forward(x, params):
    w1, b1, w, b, w2, b2 = params

    def conv(xx, wt, bs, stride):
        y = lax.conv_general_dilated(
            xx, wt, (stride, stride), ((1, 1), (1, 1)),
            dimension_numbers=("NCHW", "OIHW", "NCHW"))
        return y + bs[None, :, None, None]

    y1 = jnp.maximum(conv(x, w1, b1, 2), 0.0)
    return conv(y1, w, b, 1) + conv(x, w2, b2, 2)


if __name__ == "__main__":
    key = jax.random.PRNGKey(0)
    kx, kp = jax.random.split(key)
    N, Cin, Cout, H, W = 2, 4, 8, 16, 16

    x = jax.random.normal(kx, (N, Cin, H, W), jnp.float32)
    params = init_params(kp, Cin, Cout)

    ref = reference_forward(x, params)

    # Small-Cin (first D-block) path: wrapper-side 9*Cin im2col + packed dot.
    # Two parallel grid steps -> both v7x TensorCores busy.
    out = jax.block_until_ready(dblock_forward(x, params, batch_block=1))
    assert out.shape == ref.shape == (N, Cout, H // 2, W // 2), (out.shape, ref.shape)
    # bf16 MXU operands with f32 accumulation -> looser tolerance vs f32 ref.
    np.testing.assert_allclose(np.asarray(out), np.asarray(ref),
                               rtol=5e-2, atol=5e-2)

    # Large-Cin path (forced): parity-grid input + per-tap accumulated matmuls.
    out2 = jax.block_until_ready(
        dblock_forward(x, params, batch_block=1, per_tap_input=True))
    np.testing.assert_allclose(np.asarray(out2), np.asarray(ref),
                               rtol=5e-2, atol=5e-2)

    # Whole batch per grid step (bigger MXU M; useful on single-TC v5e/v6e).
    out3 = jax.block_until_ready(dblock_forward(x, params, batch_block=2))
    np.testing.assert_allclose(np.asarray(out3), np.asarray(ref),
                               rtol=5e-2, atol=5e-2)

    print("KERNEL_OK")
</pallas_src>

<mosaic_0001>
module attributes {stable_mosaic.version = 11 : i64} {
  func.func @kernel(%arg0: i32, %arg1: memref<1x64x36xbf16, #tpu.memory_space<vmem>>, %arg2: memref<36x16xbf16, #tpu.memory_space<vmem>>, %arg3: memref<1x8xf32, #tpu.memory_space<vmem>>, %arg4: memref<72x8xbf16, #tpu.memory_space<vmem>>, %arg5: memref<1x8xf32, #tpu.memory_space<vmem>>, %arg6: memref<1x64x8xf32, #tpu.memory_space<vmem>>) attributes {dimension_semantics = [#tpu.dimension_semantics<parallel>], iteration_bounds = array<i64: 2>, scalar_prefetch = 0 : i64, scratch_operands = 0 : i64, tpu.core_type = #tpu.core_type<tc>, window_params = [{transform_indices = @transform_0, window_bounds = array<i64: 1, 64, 36>}, {pipeline_mode = #tpu.pipeline_mode<synchronous>, transform_indices = @transform_1, window_bounds = array<i64: 36, 16>}, {pipeline_mode = #tpu.pipeline_mode<synchronous>, transform_indices = @transform_2, window_bounds = array<i64: 1, 8>}, {pipeline_mode = #tpu.pipeline_mode<synchronous>, transform_indices = @transform_3, window_bounds = array<i64: 72, 8>}, {pipeline_mode = #tpu.pipeline_mode<synchronous>, transform_indices = @transform_4, window_bounds = array<i64: 1, 8>}, {transform_indices = @transform_5, window_bounds = array<i64: 1, 64, 8>}]} {
    %c0 = arith.constant 0 : index
    %c0_0 = arith.constant 0 : index
    %c0_1 = arith.constant 0 : index
    %0 = vector.load %arg1[%c0, %c0_0, %c0_1] : memref<1x64x36xbf16, #tpu.memory_space<vmem>>, vector<1x64x36xbf16>
    %1 = vector.shape_cast %0 : vector<1x64x36xbf16> to vector<64x36xbf16>
    %c0_2 = arith.constant 0 : index
    %c0_3 = arith.constant 0 : index
    %2 = vector.load %arg2[%c0_2, %c0_3] : memref<36x16xbf16, #tpu.memory_space<vmem>>, vector<36x16xbf16>
    %cst = arith.constant dense<0.000000e+00> : vector<64x16xf32>
    %3 = tpu.matmul %1, %2, %cst {dimension_numbers = #tpu.dot_dimension_numbers<[1], [0], [0], [1], [0, 0, 1, 1], [], []>} : vector<64x36xbf16>, vector<36x16xbf16>, vector<64x16xf32> -> vector<64x16xf32>
    %4 = vector.extract_strided_slice %3 {offsets = [0, 0], sizes = [64, 8], strides = [1, 1]} : vector<64x16xf32> to vector<64x8xf32>
    %c0_4 = arith.constant 0 : index
    %c0_5 = arith.constant 0 : index
    %5 = vector.load %arg3[%c0_4, %c0_5] : memref<1x8xf32, #tpu.memory_space<vmem>>, vector<1x8xf32>
    %6 = vector.broadcast %5 : vector<1x8xf32> to vector<64x8xf32>
    %7 = arith.addf %4, %6 : vector<64x8xf32>
    %cst_6 = arith.constant 0.000000e+00 : f32
    %8 = vector.broadcast %cst_6 : f32 to vector<64x8xf32>
    %9 = arith.maximumf %7, %8 : vector<64x8xf32>
    %10 = vector.extract_strided_slice %3 {offsets = [0, 8], sizes = [64, 8], strides = [1, 1]} : vector<64x16xf32> to vector<64x8xf32>
    %c0_7 = arith.constant 0 : index
    %c0_8 = arith.constant 0 : index
    %11 = vector.load %arg5[%c0_7, %c0_8] : memref<1x8xf32, #tpu.memory_space<vmem>>, vector<1x8xf32>
    %12 = vector.broadcast %11 : vector<1x8xf32> to vector<64x8xf32>
    %13 = arith.addf %10, %12 : vector<64x8xf32>
    %14 = vector.shape_cast %9 : vector<64x8xf32> to vector<1x8x8x8xf32>
    %15 = arith.truncf %14 : vector<1x8x8x8xf32> to vector<1x8x8x8xbf16>
    %cst_9 = arith.constant 0.000000e+00 : bf16
    %16 = vector.broadcast %cst_9 : bf16 to vector<1x1x8x8xbf16>
    %17 = tpu.concatenate %16, %15, %16 in 1 : vector<1x1x8x8xbf16>, vector<1x8x8x8xbf16>, vector<1x1x8x8xbf16> -> vector<1x10x8x8xbf16>
    %cst_10 = arith.constant 0.000000e+00 : bf16
    %18 = vector.broadcast %cst_10 : bf16 to vector<1x10x1x8xbf16>
    %19 = tpu.concatenate %18, %17, %18 in 2 : vector<1x10x1x8xbf16>, vector<1x10x8x8xbf16>, vector<1x10x1x8xbf16> -> vector<1x10x10x8xbf16>
    %20 = vector.extract_strided_slice %19 {offsets = [0, 0, 0, 0], sizes = [1, 8, 8, 8], strides = [1, 1, 1, 1]} : vector<1x10x10x8xbf16> to vector<1x8x8x8xbf16>
    %21 = vector.shape_cast %20 : vector<1x8x8x8xbf16> to vector<64x8xbf16>
    %c0_11 = arith.constant 0 : index
    %c0_12 = arith.constant 0 : index
    %22 = vector.load %arg4[%c0_11, %c0_12] : memref<72x8xbf16, #tpu.memory_space<vmem>>, vector<8x8xbf16>
    %cst_13 = arith.constant dense<0.000000e+00> : vector<64x8xf32>
    %23 = tpu.matmul %21, %22, %cst_13 {dimension_numbers = #tpu.dot_dimension_numbers<[1], [0], [0], [1], [0, 0, 1, 1], [], []>} : vector<64x8xbf16>, vector<8x8xbf16>, vector<64x8xf32> -> vector<64x8xf32>
    %24 = arith.addf %13, %23 : vector<64x8xf32>
    %25 = vector.extract_strided_slice %19 {offsets = [0, 0, 1, 0], sizes = [1, 8, 8, 8], strides = [1, 1, 1, 1]} : vector<1x10x10x8xbf16> to vector<1x8x8x8xbf16>
    %26 = vector.shape_cast %25 : vector<1x8x8x8xbf16> to vector<64x8xbf16>
    %c8 = arith.constant 8 : index
    %c0_14 = arith.constant 0 : index
    %27 = vector.load %arg4[%c8, %c0_14] : memref<72x8xbf16, #tpu.memory_space<vmem>>, vector<8x8xbf16>
    %cst_15 = arith.constant dense<0.000000e+00> : vector<64x8xf32>
    %28 = tpu.matmul %26, %27, %cst_15 {dimension_numbers = #tpu.dot_dimension_numbers<[1], [0], [0], [1], [0, 0, 1, 1], [], []>} : vector<64x8xbf16>, vector<8x8xbf16>, vector<64x8xf32> -> vector<64x8xf32>
    %29 = arith.addf %24, %28 : vector<64x8xf32>
    %30 = vector.extract_strided_slice %19 {offsets = [0, 0, 2, 0], sizes = [1, 8, 8, 8], strides = [1, 1, 1, 1]} : vector<1x10x10x8xbf16> to vector<1x8x8x8xbf16>
    %31 = vector.shape_cast %30 : vector<1x8x8x8xbf16> to vector<64x8xbf16>
    %c16 = arith.constant 16 : index
    %c0_16 = arith.constant 0 : index
    %32 = vector.load %arg4[%c16, %c0_16] : memref<72x8xbf16, #tpu.memory_space<vmem>>, vector<8x8xbf16>
    %cst_17 = arith.constant dense<0.000000e+00> : vector<64x8xf32>
    %33 = tpu.matmul %31, %32, %cst_17 {dimension_numbers = #tpu.dot_dimension_numbers<[1], [0], [0], [1], [0, 0, 1, 1], [], []>} : vector<64x8xbf16>, vector<8x8xbf16>, vector<64x8xf32> -> vector<64x8xf32>
    %34 = arith.addf %29, %33 : vector<64x8xf32>
    %35 = vector.extract_strided_slice %19 {offsets = [0, 1, 0, 0], sizes = [1, 8, 8, 8], strides = [1, 1, 1, 1]} : vector<1x10x10x8xbf16> to vector<1x8x8x8xbf16>
    %36 = vector.shape_cast %35 : vector<1x8x8x8xbf16> to vector<64x8xbf16>
    %c24 = arith.constant 24 : index
    %c0_18 = arith.constant 0 : index
    %37 = vector.load %arg4[%c24, %c0_18] : memref<72x8xbf16, #tpu.memory_space<vmem>>, vector<8x8xbf16>
    %cst_19 = arith.constant dense<0.000000e+00> : vector<64x8xf32>
    %38 = tpu.matmul %36, %37, %cst_19 {dimension_numbers = #tpu.dot_dimension_numbers<[1], [0], [0], [1], [0, 0, 1, 1], [], []>} : vector<64x8xbf16>, vector<8x8xbf16>, vector<64x8xf32> -> vector<64x8xf32>
    %39 = arith.addf %34, %38 : vector<64x8xf32>
    %40 = vector.extract_strided_slice %19 {offsets = [0, 1, 1, 0], sizes = [1, 8, 8, 8], strides = [1, 1, 1, 1]} : vector<1x10x10x8xbf16> to vector<1x8x8x8xbf16>
    %41 = vector.shape_cast %40 : vector<1x8x8x8xbf16> to vector<64x8xbf16>
    %c32 = arith.constant 32 : index
    %c0_20 = arith.constant 0 : index
    %42 = vector.load %arg4[%c32, %c0_20] : memref<72x8xbf16, #tpu.memory_space<vmem>>, vector<8x8xbf16>
    %cst_21 = arith.constant dense<0.000000e+00> : vector<64x8xf32>
    %43 = tpu.matmul %41, %42, %cst_21 {dimension_numbers = #tpu.dot_dimension_numbers<[1], [0], [0], [1], [0, 0, 1, 1], [], []>} : vector<64x8xbf16>, vector<8x8xbf16>, vector<64x8xf32> -> vector<64x8xf32>
    %44 = arith.addf %39, %43 : vector<64x8xf32>
    %45 = vector.extract_strided_slice %19 {offsets = [0, 1, 2, 0], sizes = [1, 8, 8, 8], strides = [1, 1, 1, 1]} : vector<1x10x10x8xbf16> to vector<1x8x8x8xbf16>
    %46 = vector.shape_cast %45 : vector<1x8x8x8xbf16> to vector<64x8xbf16>
    %c40 = arith.constant 40 : index
    %c0_22 = arith.constant 0 : index
    %47 = vector.load %arg4[%c40, %c0_22] : memref<72x8xbf16, #tpu.memory_space<vmem>>, vector<8x8xbf16>
    %cst_23 = arith.constant dense<0.000000e+00> : vector<64x8xf32>
    %48 = tpu.matmul %46, %47, %cst_23 {dimension_numbers = #tpu.dot_dimension_numbers<[1], [0], [0], [1], [0, 0, 1, 1], [], []>} : vector<64x8xbf16>, vector<8x8xbf16>, vector<64x8xf32> -> vector<64x8xf32>
    %49 = arith.addf %44, %48 : vector<64x8xf32>
    %50 = vector.extract_strided_slice %19 {offsets = [0, 2, 0, 0], sizes = [1, 8, 8, 8], strides = [1, 1, 1, 1]} : vector<1x10x10x8xbf16> to vector<1x8x8x8xbf16>
    %51 = vector.shape_cast %50 : vector<1x8x8x8xbf16> to vector<64x8xbf16>
    %c48 = arith.constant 48 : index
    %c0_24 = arith.constant 0 : index
    %52 = vector.load %arg4[%c48, %c0_24] : memref<72x8xbf16, #tpu.memory_space<vmem>>, vector<8x8xbf16>
    %cst_25 = arith.constant dense<0.000000e+00> : vector<64x8xf32>
    %53 = tpu.matmul %51, %52, %cst_25 {dimension_numbers = #tpu.dot_dimension_numbers<[1], [0], [0], [1], [0, 0, 1, 1], [], []>} : vector<64x8xbf16>, vector<8x8xbf16>, vector<64x8xf32> -> vector<64x8xf32>
    %54 = arith.addf %49, %53 : vector<64x8xf32>
    %55 = vector.extract_strided_slice %19 {offsets = [0, 2, 1, 0], sizes = [1, 8, 8, 8], strides = [1, 1, 1, 1]} : vector<1x10x10x8xbf16> to vector<1x8x8x8xbf16>
    %56 = vector.shape_cast %55 : vector<1x8x8x8xbf16> to vector<64x8xbf16>
    %c56 = arith.constant 56 : index
    %c0_26 = arith.constant 0 : index
    %57 = vector.load %arg4[%c56, %c0_26] : memref<72x8xbf16, #tpu.memory_space<vmem>>, vector<8x8xbf16>
    %cst_27 = arith.constant dense<0.000000e+00> : vector<64x8xf32>
    %58 = tpu.matmul %56, %57, %cst_27 {dimension_numbers = #tpu.dot_dimension_numbers<[1], [0], [0], [1], [0, 0, 1, 1], [], []>} : vector<64x8xbf16>, vector<8x8xbf16>, vector<64x8xf32> -> vector<64x8xf32>
    %59 = arith.addf %54, %58 : vector<64x8xf32>
    %60 = vector.extract_strided_slice %19 {offsets = [0, 2, 2, 0], sizes = [1, 8, 8, 8], strides = [1, 1, 1, 1]} : vector<1x10x10x8xbf16> to vector<1x8x8x8xbf16>
    %61 = vector.shape_cast %60 : vector<1x8x8x8xbf16> to vector<64x8xbf16>
    %c64 = arith.constant 64 : index
    %c0_28 = arith.constant 0 : index
    %62 = vector.load %arg4[%c64, %c0_28] : memref<72x8xbf16, #tpu.memory_space<vmem>>, vector<8x8xbf16>
    %cst_29 = arith.constant dense<0.000000e+00> : vector<64x8xf32>
    %63 = tpu.matmul %61, %62, %cst_29 {dimension_numbers = #tpu.dot_dimension_numbers<[1], [0], [0], [1], [0, 0, 1, 1], [], []>} : vector<64x8xbf16>, vector<8x8xbf16>, vector<64x8xf32> -> vector<64x8xf32>
    %64 = arith.addf %59, %63 : vector<64x8xf32>
    %65 = vector.shape_cast %64 : vector<64x8xf32> to vector<1x64x8xf32>
    %c0_30 = arith.constant 0 : index
    %c0_31 = arith.constant 0 : index
    %c0_32 = arith.constant 0 : index
    %66 = vector.load %arg6[%c0_30, %c0_31, %c0_32] : memref<1x64x8xf32, #tpu.memory_space<vmem>>, vector<1x64x8xf32>
    tpu.vector_store %arg6[%c0_30, %c0_31, %c0_32], %65 {strides = array<i32>} : memref<1x64x8xf32, #tpu.memory_space<vmem>>, vector<1x64x8xf32>,
    return
  }
  func.func @transform_0(%arg0: i32) -> (i32, i32, i32) {
    %c0_i32 = arith.constant 0 : i32
    %c0_i32_0 = arith.constant 0 : i32
    %c0_i32_1 = arith.constant 0 : i32
    return %arg0, %c0_i32, %c0_i32_0 : i32, i32, i32
  }
  func.func @transform_1(%arg0: i32) -> (i32, i32) {
    %c0_i32 = arith.constant 0 : i32
    %c0_i32_0 = arith.constant 0 : i32
    %c0_i32_1 = arith.constant 0 : i32
    return %c0_i32, %c0_i32_0 : i32, i32
  }
  func.func @transform_2(%arg0: i32) -> (i32, i32) {
    %c0_i32 = arith.constant 0 : i32
    %c0_i32_0 = arith.constant 0 : i32
    %c0_i32_1 = arith.constant 0 : i32
    return %c0_i32, %c0_i32_0 : i32, i32
  }
  func.func @transform_3(%arg0: i32) -> (i32, i32) {
    %c0_i32 = arith.constant 0 : i32
    %c0_i32_0 = arith.constant 0 : i32
    %c0_i32_1 = arith.constant 0 : i32
    return %c0_i32, %c0_i32_0 : i32, i32
  }
  func.func @transform_4(%arg0: i32) -> (i32, i32) {
    %c0_i32 = arith.constant 0 : i32
    %c0_i32_0 = arith.constant 0 : i32
    %c0_i32_1 = arith.constant 0 : i32
    return %c0_i32, %c0_i32_0 : i32, i32
  }
  func.func @transform_5(%arg0: i32) -> (i32, i32, i32) {
    %c0_i32 = arith.constant 0 : i32
    %c0_i32_0 = arith.constant 0 : i32
    %c0_i32_1 = arith.constant 0 : i32
    return %arg0, %c0_i32, %c0_i32_0 : i32, i32, i32
  }
}

</mosaic_0001>

<bundles_post_ra>
// kernel: tpu_custom_call.1
= control target key start
LH: loop header
LB: loop body
LE: loop exit
PB: predicated region body
PF: predicated region fallthrough
CT: control target
= control target key end

     0   :  { %10 = vsyncpa [#allocation3], 0  ;;  %s3503_s0 = inlined_call_operand.hbm [shape: bf16[2,64,36], index: 0, kind: input, shape index: {}]   ;;  %s3504_s1 = inlined_call_operand.hbm [shape: bf16[36,16], index: 1, kind: input, shape index: {}]   ;;  %s3505_s2 = inlined_call_operand.hbm [shape: f32[1,8], index: 2, kind: input, shape index: {}]   ;;  %s3506_s3 = inlined_call_operand.hbm [shape: bf16[72,8], index: 3, kind: input, shape index: {}]   ;;  %s3507_s4 = inlined_call_operand.hbm [shape: f32[1,8], index: 4, kind: input, shape index: {}]   ;;  %s3508_s5 = inlined_call_operand.hbm [shape: f32[2,64,8], index: 5, kind: output, shape index: {}]  }
   0x1   :  { %12 = vsyncpa [#allocation3 + $0x1], 0 }
   0x2   :  { %13 = vsyncpa [#allocation6], 0 }
   0x3   :  { %14 = vsyncpa [#allocation9], 0 }
   0x4   :  { %15 = vsyncpa [#allocation4], 0 }
   0x5   :  { %17 = vsyncpa [#allocation4 + $0x1], 0  ;;  %s2712_s18 = smov 0   ;;  %s2714_s19 = smov 0  }
   0x6   :  { %s2716_s20 = smov 0   ;;  %s2718_s21 = smov 0  }
   0x7 LB: > { %s2733_s22 = sadd.s32 4294967295, %s2668_s21   ;;  %s2059_s23 = sadd.s32 4294967294, %s2668_s21   ;;  %s2668_s21 = sphi %s2718_s21, %s3559_s21   ;;  %s2664_s20 = sphi %s2716_s20, %s3558_s20   ;;  %s2660_s19 = sphi %s2714_s19, %s3557_s19   ;;  %s2656_s18 = sphi %s2712_s18, %s3556_s18  }
   0x8   : > { %p43_p0 = scmp.ne.s32.totalorder %s2660_s19, %s2656_s18  ;;  %p3509_p1 = scmp.eq.s32.totalorder %s2733_s22, 0 }
   0x9   : > { %p157_p3 = scmp.eq.s32.totalorder %s2059_s23, 1  ;;  %p2060_p5 = scmp.ge.s32.totalorder %s2668_s21, 1 }
   0xa   : > { %p2742_p4 = por %p3509_p1, %p43_p0  ;;  %p164_p7 = scmp.lt.s32.totalorder %s2668_s21, 3 }
   0xb   : > { %p2747_p6 = por %p157_p3, %p43_p0  ;;  %s2670_s27 = smov [#allocation5]  }
   0xc   : > { %s3518_s24 = scalar_select %p2742_p4, 1, 0 }
   0xd   : > { %s3519_s25 = scalar_select %p2747_p6, 1, 0 }
   0xe   : > { %p2752_p8 = pnand %p2060_p5, %p164_p7  ;;  %s176_s28 = sshll.u32 %s2670_s27, 4  ;;  %s2756_s28 = int_to_ptr.vmem [resolvable:$true] %s176_s28 }
   0xf   : > { %s2671_s30 = smov [#allocation8]   ;;  %s2672_s7 = smov [#allocation7]  }
  0x10   : > { %s3520_s26 = scalar_select %p2752_p8, 1, 0 }
  0x11   : > { %p2372_p9 = pneg %p2752_p8  ;;  %s200_s6 = sshll.u32 %s2671_s30, 4  ;;  %s2767_s6 = int_to_ptr.vmem [resolvable:$true] %s200_s6 }
  0x12   : > { %s2769_s8 = sshll.u32 %s2672_s7, 4  ;;  %s2452_s11 = scalar_lea.hbm %s3504_s1, 320  ;;  %s191_s8 = int_to_ptr.vmem [resolvable:$true] %s2769_s8 }
  0x13   : > { %p2763_p11 = pnand %p2372_p9, %p3509_p1  ;;  %p2453_p12 = scmp.ne.s32.totalorder %s3504_s1, %s2452_s11 }
  0x14   : > { %p2459_p5 = scmp.lt.u32.totalorder %s2452_s11, %s3504_s1 }
  0x15   : > { %p2779_p13 = pneg %p2763_p11 }
  0x17   : > { %p2455_p0 = pnand %p2779_p13, %p2453_p12 }
  0x19   : > { %p2456_p3 = pneg %p2455_p0 }
  0x1b   : > { %p2461_p7 = pnand %p2459_p5, %p2456_p3 }
  0x1d   : > { %2464 = shalt.err (!%p2461_p7)
}
  0x1e   : > { %s2465_s17 = scalar_lea.vmem %s2756_s28, 320  ;;  %p2473_p2 = scmp.lt.s32.totalorder %s2756_s28, %s2756_s28 }
  0x1f   : > { %p2466_p9 = scmp.ne.s32.totalorder %s2756_s28, %s2465_s17  ;;  %p2474_p6 = scmp.lt.s32.totalorder %s2465_s17, %s2465_s17 }
  0x21   : > { %p2468_p10 = pnand %p2466_p9, %p2779_p13  ;;  %p2475_p12 = por %p2474_p6, %p2473_p2 }
  0x23   : > { %p2469_p1 = pneg %p2468_p10 }
  0x25   : > { %p2476_p0 = pnand %p2475_p12, %p2469_p1 }
  0x27   : > { %2479 = shalt.err (!%p2476_p0)
}
  0x28   : > { %s2673_s23 = smov 64   ;;  %s2674_s27 = smov 4  }
  0x29   : > { %2375 = dma.hbm_to_vmem [thread:$0]  (!%p2763_p11), %s3504_s1, 320, %s2756_s28, [#allocation6], %s2673_s23, %s2673_s23, %s2674_s27  }
  0x2a   : > { %s2480_s11 = scalar_lea.hbm %s3506_s3, 576 }
  0x2b   : > { %p2481_p1 = scmp.ne.s32.totalorder %s3506_s3, %s2480_s11  ;;  %p2487_p10 = scmp.lt.u32.totalorder %s2480_s11, %s3506_s3 }
  0x2d   : > { %p2483_p2 = pnand %p2481_p1, %p2779_p13 }
  0x2f   : > { %p2484_p6 = pneg %p2483_p2 }
  0x31   : > { %p2489_p3 = pnand %p2487_p10, %p2484_p6 }
  0x33   : > { %2492 = shalt.err (!%p2489_p3)
}
  0x34   : > { %s2493_s28 = scalar_lea.vmem %s2767_s6, 576  ;;  %p2501_p12 = scmp.lt.s32.totalorder %s2767_s6, %s2767_s6 }
  0x35   : > { %p2494_p5 = scmp.ne.s32.totalorder %s2767_s6, %s2493_s28  ;;  %p2502_p0 = scmp.lt.s32.totalorder %s2493_s28, %s2493_s28 }
  0x37   : > { %p2496_p7 = pnand %p2494_p5, %p2779_p13  ;;  %p2503_p1 = por %p2502_p0, %p2501_p12 }
  0x39   : > { %p2497_p9 = pneg %p2496_p7 }
  0x3b   : > { %p2504_p2 = pnand %p2503_p1, %p2497_p9 }
  0x3d   : > { %2507 = shalt.err (!%p2504_p2)
}
  0x3e   : > { %2381 = dma.hbm_to_vmem [thread:$0]  (!%p2763_p11), %s3506_s3, 576, %s2767_s6, [#allocation9], %s2673_s23, %s2673_s23, %s2674_s27  }
  0x3f   : > { %s2508_s10 = scalar_lea.hbm %s3505_s2, 16 }
  0x40   : > { %p2509_p6 = scmp.ne.s32.totalorder %s3505_s2, %s2508_s10  ;;  %p2515_p5 = scmp.lt.u32.totalorder %s2508_s10, %s3505_s2 }
  0x42   : > { %p2511_p10 = pnand %p2509_p6, %p2779_p13 }
  0x44   : > { %p2512_p3 = pneg %p2511_p10 }
  0x46   : > { %p2517_p7 = pnand %p2515_p5, %p2512_p3 }
  0x48   : > { %2520 = shalt.err (!%p2517_p7)
}
  0x49   : > { %s2521_s16 = scalar_lea.vmem %s191_s8, 16  ;;  %s2528_s6 = scalar_lea.vmem %s191_s8, 32 }
  0x4a   : > { %p2522_p9 = scmp.ne.s32.totalorder %s191_s8, %s2521_s16  ;;  %p2529_p1 = scmp.lt.s32.totalorder %s191_s8, %s191_s8 }
  0x4b   : > { %p2530_p2 = scmp.lt.s32.totalorder %s2528_s6, %s2521_s16 }
  0x4c   : > { %p2524_p12 = pnand %p2522_p9, %p2779_p13 }
  0x4d   : > { %p2531_p4 = por %p2530_p2, %p2529_p1 }
  0x4e   : > { %p2525_p0 = pneg %p2524_p12 }
  0x50   : > { %p2532_p8 = pnand %p2531_p4, %p2525_p0 }
  0x52   : > { %2535 = shalt.err (!%p2532_p8)
}
  0x53   : > { %2378 = dma.hbm_to_vmem [thread:$0]  (!%p2763_p11), %s3505_s2, 16, %s191_s8, [#allocation6]  }
  0x54   : > { %s2675_s30 = smov [#allocation10]   ;;  %s2536_s11 = scalar_lea.hbm %s3507_s4, 16 }
  0x55   : > { %s214_s7 = sshll.u32 %s2675_s30, 4  ;;  %p2537_p6 = scmp.ne.s32.totalorder %s3507_s4, %s2536_s11  ;;  %s215_s7 = int_to_ptr.vmem [resolvable:$true] %s214_s7 }
  0x56   : > { %p2543_p10 = scmp.lt.u32.totalorder %s2536_s11, %s3507_s4 }
  0x57   : > { %p2539_p4 = pnand %p2537_p6, %p2779_p13 }
  0x59   : > { %p2540_p8 = pneg %p2539_p4 }
  0x5b   : > { %p2545_p3 = pnand %p2543_p10, %p2540_p8 }
  0x5d   : > { %2548 = shalt.err (!%p2545_p3)
}
  0x5e   : > { %s2549_s8 = scalar_lea.vmem %s215_s7, 16  ;;  %s2556_s6 = scalar_lea.vmem %s215_s7, 32 }
  0x5f   : > { %p2550_p5 = scmp.ne.s32.totalorder %s215_s7, %s2549_s8  ;;  %p2557_p12 = scmp.lt.s32.totalorder %s215_s7, %s215_s7 }
  0x60   : > { %p2558_p0 = scmp.lt.s32.totalorder %s2556_s6, %s2549_s8 }
  0x61   : > { %p2552_p7 = pnand %p2550_p5, %p2779_p13 }
  0x62   : > { %p2559_p1 = por %p2558_p0, %p2557_p12 }
  0x63   : > { %p2553_p9 = pneg %p2552_p7 }
  0x65   : > { %p2560_p2 = pnand %p2559_p1, %p2553_p9 }
  0x67   : > { %2563 = shalt.err (!%p2560_p2)
}
  0x68   : > { %2384 = dma.hbm_to_vmem [thread:$0]  (!%p2763_p11), %s3507_s4, 16, %s215_s7, [#allocation9]  }
  0x69   : > { %s2867_s14 = sadd.s32 1, %s2668_s21   ;;  %s30_s30 = sadd.s32 1, %s2664_s20 }
  0x6a   : > { %s27_s29 = ssub.s32 %s2668_s21, %s2867_s14  ;;  %p37_p13 = scmp.ne.s32.totalorder %s2664_s20, %s2660_s19 }
  0x6b   : > { %p28_p6 = scmp.eq.s32.totalorder %s27_s29, 0  ;;  %p38_p4 = scmp.eq.s32.totalorder %s2668_s21, 0 }
  0x6c   : > { %p3523_p8 = scmp.eq.s32.totalorder %s2733_s22, 1  ;;  %p2397_p3 = scmp.lt.s32.totalorder %s2668_s21, 2 }
  0x6d   : > { %s2883_s10 = scalar_select %p28_p6, %s2664_s20, %s30_s30  }
  0x6e   : > { %p2877_p10 = por %p3523_p8, %p37_p13  ;;  %p39_p5 = por %p38_p4, %p37_p13 }
  0x6f   : > { %s225_s11 = sand.u32 1, %s2664_s20   ;;  %s2184_s7 = sshll.u32 %s2668_s21, 9 }
  0x70   : > { %s2066_s12 = sshll.u32 %s225_s11, 5  ;;  %s2890_s16 = scalar_lea.hbm %s3503_s0, %s2184_s7 }
  0x71   : > { %s229_s8 = scalar_lea.vmem [#allocation2], %s2066_s12  ;;  %p2894_p11 = pnand %p2397_p3, %p39_p5 }
  0x72   : > { %s236_s6 = sshll.u32 %s229_s8, 4  ;;  %s2898_s17 = scalar_lea.sflag [#allocation3], %s225_s11  ;;  %s2892_s6 = int_to_ptr.vmem [resolvable:$true] %s236_s6 }
  0x73   : > { %s2564_s30 = scalar_lea.hbm %s2890_s16, 512  ;;  %p2566_p9 = pneg %p2894_p11 }
  0x74   : > { %p2565_p7 = scmp.ne.s32.totalorder %s2890_s16, %s2564_s30  ;;  %s2569_s7 = scalar_lea.hbm %s3503_s0, 1024 }
  0x75   : > { %p2570_p1 = scmp.lt.u32.totalorder %s2890_s16, %s3503_s0  ;;  %p2571_p2 = scmp.lt.u32.totalorder %s2569_s7, %s2564_s30 }
  0x76   : > { %p2567_p12 = pnand %p2566_p9, %p2565_p7  ;;  %p2573_p6 = scmp.lt.u32.totalorder %s2564_s30, %s2890_s16 }
  0x77   : > { %p2572_p13 = por %p2571_p2, %p2570_p1 }
  0x78   : > { %p2568_p0 = pneg %p2567_p12 }
  0x79   : > { %p2574_p4 = por %p2573_p6, %p2572_p13 }
  0x7b   : > { %p2575_p8 = pnand %p2574_p4, %p2568_p0 }
  0x7d   : > { %2578 = shalt.err (!%p2575_p8)
}
  0x7e   : > { %s2579_s11 = scalar_lea.vmem %s2892_s6, 512  ;;  %s2676_s8 = smov [#allocation2]  }
  0x7f   : > { %p2580_p3 = scmp.ne.s32.totalorder %s2892_s6, %s2579_s11  ;;  %s2584_s29 = sshll.u32 %s2676_s8, 4  ;;  %s2585_s29 = int_to_ptr.vmem [resolvable:$false] %s2584_s29 }
  0x80   : > { %s2586_s12 = scalar_lea.vmem %s2585_s29, 1024  ;;  %p2587_p12 = scmp.lt.s32.totalorder %s2892_s6, %s2585_s29 }
  0x81   : > { %p2582_p5 = pnand %p2580_p3, %p2566_p9  ;;  %p2588_p1 = scmp.lt.s32.totalorder %s2586_s12, %s2579_s11 }
  0x83   : > { %p2583_p7 = pneg %p2582_p5  ;;  %p2589_p2 = por %p2588_p1, %p2587_p12 }
  0x85   : > { %p2590_p13 = pnand %p2589_p2, %p2583_p7 }
  0x87   : > { %2593 = shalt.err (!%p2590_p13)
}
  0x88   : > { %2388 = dma.hbm_to_vmem [thread:$0]  (!%p2894_p11), %s2890_s16, 512, %s2892_s6, %s2898_s17, %s2673_s23, %s2673_s23, %s2674_s27  }
  0x89   : > { %p3526_p9 = scmp.ne.s32.totalorder %s3520_s26, 0 }
  0x8b   : > { %248 = sbr.rel (%p3526_p9) target bundleno = 1010 (0x3f2), region = 40 }
  0x92   : > { %s2932_s30 = sand.u32 1, %s2660_s19   ;;  %p3527_p0 = scmp.ne.s32.totalorder %s3518_s24, 0 }
  0x93   : > { %s2070_s7 = sshll.u32 %s2932_s30, 5  ;;  %s251_s13 = scalar_lea.sflag [#allocation3], %s2932_s30 }
  0x94   : > { %s254_s15 = scalar_lea.vmem [#allocation2], %s2070_s7 }
  0x95   : > { %2639 = dma.done.wait (%p3527_p0), %s251_s13, 512  }
  0x96   : > { %2641 = vsyncadd (%p3527_p0), %s251_s13, 4294966784  ;;  %p3528_p6 = scmp.eq.s32.totalorder %s2733_s22, 0 }
  0x98   : > { %2643 = dma.done.wait (%p3528_p6), [#allocation6], 336   ;;  %p3529_p11 = pmov %p3528_p6 }
  0x99   : > { %p3530_p4 = pmov %p3528_p6 }
  0x9a   : > { %2645 = vsyncadd (%p3529_p11), [#allocation6], 4294966960 }
  0x9b   : > { %2647 = dma.done.wait (%p3530_p4), [#allocation9], 592   ;;  %p3531_p8 = pmov %p3530_p4 }
  0x9c   : > { %v2445_v0 = vld [vmem:[#allocation5] sm:$0xff]   ;;  %v2446_v1 = vld [vmem:[#allocation5 + $0x8] sm:$0xff]   ;;  %vm346_vm0 = vcmask 293888   ;;  %v2447_v2 = vld [vmem:[#allocation5 + $0x10] ss:$0 sps:$4 sm:$0x33]  }
  0x9d   : > { %2649 = vsyncadd (%p3531_p8), [#allocation9], 4294966704  ;;  %2238 = vmatprep.subr.bf16.mxu0 %v2445_v0  ;;  %v2448_v3 = vld [vmem:[%s254_s15] sm:$0xff]   ;;  %vm359_vm1 = vcmask 1041408   ;;  %v2088_v4 = vld [vmem:[#allocation10] ss:$0 sm:$0xff] }
  0x9e   : > { %2239 = vmatpush3.bf16.msra.mxu0 %v2445_v0  ;;  %2244 = vmatprep.mubr.msk.bf16.mxu0 %vm346_vm0, %v2448_v3  ;;  %s2677_s24 = smov 8   ;;  %v361_v5 = vsel %vm359_vm1, %v2447_v2, 0  ;;  %v2449_v6 = vld [vmem:[%s254_s15 + $0x8] sm:$0xff]   ;;  %v2450_v7 = vld [vmem:[%s254_s15 + $0x10] sm:$0xff]   ;;  %v2451_v8 = vld [vmem:[%s254_s15 + $0x18] sm:$0xff]   ;;  %vm606_vm2 = vcmask 1043456  }
  0x9f   : > { %2240 = vmatprep.subr.bf16.mxu0 %v2446_v1  ;;  %457 = vrot.lane.b32.xlu0 %v2088_v4, %s2677_s24  ;;  %v572_v9 = vld [vmem:[#allocation8] sm:$0xf]  ;;  %v1022_v10 = vld [vmem:[#allocation8 + $0x8] sm:$0xf]  ;;  %v854_v13 = vld [vmem:[#allocation8 + $0x4] sm:$0xf] }
  0xa0   : > { %2343 = vmatprep.subr.msk.bf16.mxu1 %vm606_vm2, %v572_v9  ;;  %v608_v11 = vsel %vm606_vm2, %v572_v9, 0  ;;  %v1048_v12 = vsel %vm606_vm2, %v1022_v10, 0  ;;  %v1299_v14 = vld [vmem:[#allocation8 + $0x10] sm:$0xf]  ;;  %vm548_vm3 = vcmask 1040384   ;;  %v2678_v15 = vmov 0  }
  0xa1   : > { %2253 = vmatpush3.bf16.msra.mxu1 %v608_v11  ;;  %vm549_vm4 = vsmask.f32 256  ;;  %v479_v16 = vrot.slane %v2678_v15, 7  ;;  %vm560_vm6 = vcmask 1044480   ;;  %vm561_vm7 = vsmask.f32 4352 }
  0xa2   : > { %2241 = vmatpush3.bf16.msra.mxu0 %v2446_v1  ;;  %2344 = vmatprep.subr.msk.bf16.mxu1 %vm606_vm2, %v854_v13  ;;  %vm2959_vm5 = vmand %vm548_vm3, %vm549_vm4  ;;  %v2977_v27 = vld [vmem:[#allocation7] ss:$0 sm:$0xff]  ;;  %vm987_vm9 = vcmask 1042432   ;;  %vm988_vm10 = vcmask 1046532   ;;  %vm739_vm11 = vsmask.f32 3328 }
  0xa3   : > { %2342 = vmatprep.subr.msk.bf16.mxu0 %vm359_vm1, %v2447_v2  ;;  %vm2963_vm8 = vmand %vm560_vm6, %vm561_vm7  ;;  %v551_v19 = vsel %vm2959_vm5, 0, %v479_v16  ;;  %vm740_vm12 = vsmask.f32 7440  ;;  %v3011_v54 = vld [vmem:[#allocation8 + $0xc] sm:$0xf]  ;;  %v3018_v59 = vsel %vm606_vm2, %v854_v13, 0 }
  0xa4   : > { %v2971_v20 = vsel %vm2963_vm8, %v551_v19, 0  ;;  %vm2993_vm13 = vmor %vm987_vm9, %vm988_vm10  ;;  %v3013_v55 = vld [vmem:[#allocation8 + $0x18] sm:$0xf]  ;;  %v3021_v60 = vsel %vm606_vm2, %v1299_v14, 0  ;;  %vm593_vm15 = vcmask 64512   ;;  %s2679_s26 = smov 120  }
  0xa5   : > { %v2097_v21 = vcombine.low %v2971_v20, %v2971_v20  ;;  %v2098_v26 = vcombine.high %v2971_v20, %v2971_v20  ;;  %vm2999_vm14 = vmor %vm739_vm11, %vm740_vm12  ;;  %s2075_s23 = sshll.u32 %s2932_s30, 6  ;;  %s2185_s6 = sshll.u32 %s2733_s22, 10 }
  0xa6   : > { %2243 = vmatpush3.bf16.msra.mxu0 %v361_v5  ;;  %v3031_v5 = vsel %vm606_vm2, %v3011_v54, 0  ;;  %s296_s27 = scalar_lea.vmem [#allocation11], %s2075_s23  ;;  %s3457_s11 = scalar_lea.hbm %s3508_s5, %s2185_s6 }
  0xa7   : > { %2345 = vmatprep.subr.msk.bf16.mxu0 %vm606_vm2, %v1022_v10  ;;  %v743_v22 = vshrl.u32 %v2097_v21, 16  ;;  %v746_v23 = vshll.u32 %v2097_v21, 16  ;;  %v752_v28 = vshll.u32 %v2098_v26, 16  ;;  %v992_v35 = vrot.slane %v2098_v26, 5  ;;  %s1948_s16 = sshll.u32 %s296_s27, 4  ;;  %s1935_s8 = scalar_lea.sflag [#allocation4], %s2932_s30  ;;  %s3451_s16 = int_to_ptr.vmem [resolvable:$true] %s1948_s16 }
  0xa8   : > { %v2121_v36 = vrot.slane %v2097_v21, 9  ;;  %s2594_s22 = scalar_lea.vmem %s3451_s16, 1024  ;;  %s2680_s29 = smov [#allocation11]  }
  0xa9   : > { %2245 = vmatmul.mubr.msk.bf16.vlgmr.msra.gmra.mrb[0].mxu0 %vm346_vm0, %v2449_v6  ;;  %v745_v24 = vrot.slane %v743_v22, 4  ;;  %v748_v25 = vrot.slane %v746_v23, 5  ;;  %v754_v40 = vrot.slane %v752_v28, 5  ;;  %v3035_v6 = vsel %vm606_vm2, %v3013_v55, 0  ;;  %p2595_p3 = scmp.ne.s32.totalorder %s3451_s16, %s2594_s22  ;;  %s2598_s12 = sshll.u32 %s2680_s29, 4  ;;  %s2599_s12 = int_to_ptr.vmem [resolvable:$false] %s2598_s12 }
  0xaa   : > { %2248 = vmatprep.mubr.msk.bf16.mxu0 %vm346_vm0, %v2450_v7  ;;  %2273 = vmatpush3.bf16.msra.mxu0 %v1048_v12  ;;  %v3005_v52 = vsel %vm2993_vm13, %v2121_v36, %v992_v35  ;;  %s2600_s7 = scalar_lea.vmem %s2599_s12, 2048  ;;  %p2601_p12 = scmp.lt.s32.totalorder %s3451_s16, %s2599_s12 }
  0xab   : > { %2347 = vmatprep.subr.msk.bf16.mxu0 %vm606_vm2, %v1299_v14  ;;  %v749_v29 = vor.u32 %v748_v25, %v745_v24  ;;  %p2596_p5 = pnand %p2595_p3, %p2877_p10  ;;  %p2602_p1 = scmp.lt.s32.totalorder %s2600_s7, %s2594_s22 }
  0xad   : > { %v750_v42 = vrot.slane %v749_v29, 4  ;;  %p2597_p7 = pneg %p2596_p5  ;;  %p2603_p2 = por %p2602_p1, %p2601_p12 }
  0xaf   : > { %v3009_v53 = vsel %vm2999_vm14, %v750_v42, %v754_v40  ;;  %p2604_p13 = pnand %p2603_p2, %p2597_p7 }
  0xb1   : > { %2249 = vmatmul.mubr.msk.bf16.gmra.mrb[4].mxu0 %vm346_vm0, %v2451_v8 }
 0x17c   : > { %v2979_v30 = vpop.f32.mrb[0].mxu0 }
 0x17d   : > { %v437_v31 = vadd.f32 %v2979_v30, %v2977_v27  ;;  %v2983_v32 = vpop.f32.mrb[1].mxu0 }
 0x17e   : > { %v435_v33 = vadd.f32 %v2977_v27, %v2983_v32  ;;  %v2987_v34 = vpop.f32.mrb[2].mxu0 }
 0x17f   : > { %3536 = vst [vmem:[#allocation16_spill] sm:$0xff] %v2987_v34  ;;  %v445_v37 = vmax.f32 %v437_v31, 0.0  ;;  %v438_v38 = vadd.f32 %v2987_v34, %v2977_v27  ;;  %v2991_v39 = vpop.f32.mrb[3].mxu0 }
 0x180   : > { %3537 = vst [vmem:[#allocation17_spill] sm:$0xff] %v2991_v39  ;;  %v443_v43 = vmax.f32 %v435_v33, 0.0  ;;  %v436_v44 = vadd.f32 %v2977_v27, %v2991_v39 }
 0x181   : > { %v470_v46 = vpack.c.bf16 %v445_v37, %v445_v37  ;;  %v446_v47 = vmax.f32 %v438_v38, 0.0 }
 0x182   : > { %v468_v48 = vpack.c.bf16 %v443_v43, %v443_v43  ;;  %v444_v49 = vmax.f32 %v436_v44, 0.0 }
 0x183   : > { %v498_v50 = vshrl.u32 %v470_v46, 16  ;;  %v471_v51 = vpack.c.bf16 %v446_v47, %v446_v47  ;;  %v501_v62 = vshll.u32 %v470_v46, 16 }
 0x184   : > { %v484_v56 = vshrl.u32 %v468_v48, 16  ;;  %v469_v57 = vpack.c.bf16 %v444_v49, %v444_v49  ;;  %v3015_v58 = vpop.f32.mrb[4].mxu0  ;;  %v487_v24 = vshll.u32 %v468_v48, 16 }
 0x185   : > { %3542 = vst [vmem:[#allocation18_spill] sm:$0xff] %v3015_v58  ;;  %v500_v61 = vrot.slane %v498_v50, 7  ;;  %v505_v63 = vshrl.u32 %v471_v51, 16  ;;  %v441_v0 = vadd.f32 %v3015_v58, %v2977_v27  ;;  %v3025_v1 = vpop.f32.mrb[5].mxu0  ;;  %v508_v2 = vshll.u32 %v471_v51, 16 }
 0x186   : > { %3543 = vst [vmem:[#allocation19_spill] sm:$0xff] %v3025_v1  ;;  %v491_v3 = vshrl.u32 %v469_v57, 16  ;;  %v3027_v4 = vpop.f32.mrb[6].mxu0  ;;  %v439_v10 = vadd.f32 %v2977_v27, %v3025_v1  ;;  %v486_v12 = vrot.slane %v484_v56, 7  ;;  %v494_v14 = vshll.u32 %v469_v57, 16 }
 0x187   : > { %3544 = vst [vmem:[#allocation20_spill] sm:$0xff] %v3027_v4  ;;  %v503_v7 = vor.u32 %v501_v62, %v500_v61  ;;  %v507_v8 = vrot.slane %v505_v63, 7  ;;  %v449_v9 = vmax.f32 %v441_v0, 0.0  ;;  %v3039_v11 = vpop.f32.mrb[7].mxu0  ;;  %v442_v15 = vadd.f32 %v3027_v4, %v2977_v27 }
 0x188   : > { %3545 = vst [vmem:[#allocation21_spill] sm:$0xff] %v3039_v11  ;;  %v493_v13 = vrot.slane %v491_v3, 7  ;;  %v447_v22 = vmax.f32 %v439_v10, 0.0  ;;  %v489_v43 = vor.u32 %v487_v24, %v486_v12  ;;  %v440_v0 = vadd.f32 %v2977_v27, %v3039_v11 }
 0x189   : > { %v554_v16 = vsel %vm2959_vm5, 0, %v503_v7  ;;  %v510_v19 = vor.u32 %v508_v2, %v507_v8  ;;  %v474_v21 = vpack.c.bf16 %v449_v9, %v449_v9  ;;  %v450_v26 = vmax.f32 %v442_v15, 0.0 }
 0x18a   : > { %v3047_v23 = vsel %vm2963_vm8, %v554_v16, 0  ;;  %v496_v25 = vor.u32 %v494_v14, %v493_v13  ;;  %v472_v38 = vpack.c.bf16 %v447_v22, %v447_v22  ;;  %v448_v12 = vmax.f32 %v440_v0, 0.0 }
 0x18b   : > { %v3051_v28 = vcombine.low %v3047_v23, %v3047_v23  ;;  %v3055_v29 = vcombine.high %v3047_v23, %v3047_v23  ;;  %v555_v31 = vsel %vm2959_vm5, 0, %v510_v19  ;;  %v526_v33 = vshrl.u32 %v474_v21, 16 }
 0x18c   : > { %v3061_v35 = vsel %vm2963_vm8, %v555_v31, 0  ;;  %v553_v36 = vsel %vm2959_vm5, 0, %v496_v25  ;;  %v529_v37 = vshll.u32 %v474_v21, 16  ;;  %v512_v49 = vshrl.u32 %v472_v38, 16 }
 0x18d   : > { %v2124_v40 = vrot.slane %v3051_v28, 9  ;;  %v1004_v42 = vrot.slane %v3055_v29, 5  ;;  %v3069_v44 = vcombine.low %v3061_v35, %v3061_v35  ;;  %v3075_v47 = vsel %vm2963_vm8, %v553_v36, 0 }
 0x18e   : > { %v528_v48 = vrot.slane %v526_v33, 7  ;;  %v3079_v50 = vcombine.low %v3075_v47, %v3075_v47  ;;  %v3083_v51 = vcombine.high %v3075_v47, %v3075_v47  ;;  %v515_v56 = vshll.u32 %v472_v38, 16 }
 0x18f   : > { %v475_v57 = vpack.c.bf16 %v450_v26, %v450_v26  ;;  %v3087_v61 = vcombine.high %v3061_v35, %v3061_v35  ;;  %v514_v63 = vrot.slane %v512_v49, 7  ;;  %v552_v13 = vsel %vm2959_vm5, 0, %v489_v43 }
 0x190   : > { %v531_v62 = vor.u32 %v529_v37, %v528_v48  ;;  %v2123_v2 = vrot.slane %v3079_v50, 9  ;;  %v1000_v3 = vrot.slane %v3083_v51, 5  ;;  %v3103_v27 = vsel %vm2963_vm8, %v552_v13, 0 }
 0x191   : > { %v533_v7 = vshrl.u32 %v475_v57, 16  ;;  %v536_v8 = vshll.u32 %v475_v57, 16  ;;  %v517_v10 = vor.u32 %v515_v56, %v514_v63  ;;  %v3107_v16 = vcombine.low %v3075_v47, %v3047_v23 }
 0x192   : > { %v558_v9 = vsel %vm2959_vm5, 0, %v531_v62  ;;  %v473_v24 = vpack.c.bf16 %v448_v12, %v448_v12  ;;  %v2089_v31 = vcombine.low %v2971_v20, %v3103_v27  ;;  %v2099_v33 = vcombine.low %v3103_v27, %v3103_v27 }
 0x193   : > { %v3099_v14 = vsel %vm2963_vm8, %v558_v9, 0  ;;  %v535_v15 = vrot.slane %v533_v7, 7  ;;  %v556_v22 = vsel %vm2959_vm5, 0, %v517_v10  ;;  %v2100_v49 = vcombine.high %v3103_v27, %v3103_v27 }
 0x194   : > { %v3111_v19 = vcombine.low %v3099_v14, %v3099_v14  ;;  %v3115_v21 = vcombine.high %v3099_v14, %v3099_v14  ;;  %v3121_v25 = vsel %vm2963_vm8, %v556_v22, 0  ;;  %v519_v38 = vshrl.u32 %v473_v24, 16  ;;  %2254 = vmatprep.mubr.msk.bf16.mxu1 %vm593_vm15, %v2089_v31 }
 0x195   : > { %v538_v26 = vor.u32 %v536_v8, %v535_v15  ;;  %v3129_v36 = vcombine.low %v3121_v25, %v3121_v25  ;;  %v3133_v37 = vcombine.high %v3121_v25, %v3121_v25  ;;  %v522_v43 = vshll.u32 %v473_v24, 16  ;;  %2255 = vmatmul.mubr.msk.bf16.vlgmr.msra.gmra.mrb[0].mxu1 %vm593_vm15, %v3107_v16 }
 0x196   : > { %v757_v56 = vshrl.u32 %v2099_v33, 16  ;;  %v760_v57 = vshll.u32 %v2099_v33, 16  ;;  %v521_v63 = vrot.slane %v519_v38, 7  ;;  %v2122_v0 = vrot.slane %v2099_v33, 9  ;;  %2263 = vmatpush3.bf16.msra.mxu1 %v3018_v59 }
 0x197   : > { %v559_v48 = vsel %vm2959_vm5, 0, %v538_v26  ;;  %v3148_v7 = vsel %vm2993_vm13, %v2123_v2, %v1000_v3  ;;  %v766_v15 = vshll.u32 %v2100_v49, 16  ;;  %v996_v22 = vrot.slane %v2100_v49, 5  ;;  %2346 = vmatprep.subr.msk.bf16.mxu1 %vm606_vm2, %v3011_v54 }
 0x198   : > { %v3142_v62 = vsel %vm2963_vm8, %v559_v48, 0  ;;  %v759_v10 = vrot.slane %v757_v56, 4  ;;  %v762_v12 = vrot.slane %v760_v57, 5  ;;  %v524_v13 = vor.u32 %v522_v43, %v521_v63 }
 0x199   : > { %v3152_v8 = vcombine.low %v3142_v62, %v3142_v62  ;;  %v3156_v9 = vcombine.high %v3142_v62, %v3142_v62  ;;  %v3161_v24 = vsel %vm2993_vm13, %v2124_v40, %v1004_v42  ;;  %v3171_v3 = vcombine.low %v3061_v35, %v3121_v25 }
 0x19a   : > { %v3167_v2 = vcombine.low %v3148_v7, %v3161_v24  ;;  %v763_v26 = vor.u32 %v762_v12, %v759_v10  ;;  %v2125_v59 = vrot.slane %v3069_v44, 9  ;;  %v557_v31 = vsel %vm2959_vm5, 0, %v524_v13 }
 0x19b   : > { %v768_v33 = vrot.slane %v766_v15, 5  ;;  %v3178_v40 = vsel %vm2993_vm13, %v2122_v0, %v996_v22  ;;  %v1008_v54 = vrot.slane %v3087_v61, 5  ;;  %v3183_v42 = vsel %vm2963_vm8, %v557_v31, 0  ;;  %2258 = vmatprep.mubr.msk.bf16.mxu1 %vm593_vm15, %v3171_v3 }
 0x19c   : > { %v2129_v38 = vcombine.low %v3005_v52, %v3178_v40  ;;  %v764_v43 = vrot.slane %v763_v26, 4  ;;  %v2126_v17 = vrot.slane %v3129_v36, 9  ;;  %v2109_v48 = vcombine.low %v3183_v42, %v3183_v42 }
 0x19d   : > { %v2110_v49 = vcombine.high %v3183_v42, %v3183_v42  ;;  %v3196_v18 = vcombine.low %v3183_v42, %v3099_v14  ;;  %v3200_v56 = vsel %vm2993_vm13, %v2125_v59, %v1008_v54  ;;  %v1012_v63 = vrot.slane %v3133_v37, 5 }
 0x19e   : > { %2274 = vmatprep.mubr.msk.bf16.mxu0 %vm593_vm15, %v2129_v38  ;;  %v769_v57 = vsel %vm2999_vm14, %v764_v43, %v768_v33  ;;  %v2128_v10 = vrot.slane %v3111_v19, 9  ;;  %v2127_v13 = vrot.slane %v2109_v48, 9  ;;  %v1020_v22 = vrot.slane %v3115_v21, 5 }
 0x19f   : > { %2275 = vmatmul.mubr.msk.bf16.vlgmr.msra.gmra.mrb[8].mxu0 %vm593_vm15, %v3167_v2  ;;  %2259 = vmatmul.mubr.msk.bf16.gmra.mrb[4].mxu1 %vm593_vm15, %v3196_v18  ;;  %v2113_v12 = vcombine.low %v3009_v53, %v769_v57  ;;  %v1016_v15 = vrot.slane %v2110_v49, 5  ;;  %v3217_v26 = vsel %vm2993_vm13, %v2126_v17, %v1012_v63  ;;  %v771_v59 = vshrl.u32 %v3079_v50, 16 }
 0x1a0   : > { %v774_v31 = vshll.u32 %v3079_v50, 16  ;;  %v780_v33 = vshll.u32 %v3083_v51, 16  ;;  %2293 = vmatpush3.bf16.msra.mxu0 %v3021_v60  ;;  %v3226_v54 = vcombine.low %v3200_v56, %v3217_v26  ;;  %v3234_v43 = vsel %vm2993_vm13, %v2128_v10, %v1020_v22 }
 0x1a1   : > { %2264 = vmatprep.mubr.msk.bf16.mxu1 %vm593_vm15, %v2113_v12  ;;  %v3230_v38 = vsel %vm2993_vm13, %v2127_v13, %v1016_v15  ;;  %v785_v50 = vshrl.u32 %v3051_v28, 16  ;;  %2349 = vmatprep.subr.msk.bf16.mxu0 %vm606_vm2, %v3013_v55  ;;  %v773_v51 = vrot.slane %v771_v59, 4  ;;  %v788_v13 = vshll.u32 %v3051_v28, 16 }
 0x1a2   : > { %v3241_v60 = vcombine.low %v3230_v38, %v3234_v43  ;;  %v776_v17 = vrot.slane %v774_v31, 5  ;;  %v782_v63 = vrot.slane %v780_v33, 5  ;;  %2278 = vmatprep.mubr.msk.bf16.mxu0 %vm593_vm15, %v3226_v54  ;;  %v794_v10 = vshll.u32 %v3055_v29, 16 }
 0x1a3   : > { %v787_v12 = vrot.slane %v785_v50, 4  ;;  %v799_v15 = vshrl.u32 %v3069_v44, 16  ;;  %v802_v55 = vshll.u32 %v3069_v44, 16  ;;  %v808_v0 = vshll.u32 %v3087_v61, 16 }
 0x1a4   : > { %v777_v22 = vor.u32 %v776_v17, %v773_v51  ;;  %v813_v46 = vshrl.u32 %v3129_v36, 16  ;;  %v790_v59 = vrot.slane %v788_v13, 5  ;;  %v796_v31 = vrot.slane %v794_v10, 5 }
 0x1a5   : > { %v801_v33 = vrot.slane %v799_v15, 4  ;;  %v816_v11 = vshll.u32 %v3129_v36, 16  ;;  %v804_v50 = vrot.slane %v802_v55, 5  ;;  %v810_v4 = vrot.slane %v808_v0, 5 }
 0x1a6   : > { %v778_v1 = vrot.slane %v777_v22, 4  ;;  %v815_v28 = vrot.slane %v813_v46, 4  ;;  %v791_v29 = vor.u32 %v790_v59, %v787_v12  ;;  %v822_v44 = vshll.u32 %v3133_v37, 16 }
 0x1a7   : > { %2279 = vmatmul.mubr.msk.bf16.gmra.mrb[12].mxu0 %vm593_vm15, %v3241_v60  ;;  %v818_v51 = vrot.slane %v816_v11, 5  ;;  %v827_v17 = vshrl.u32 %v2109_v48, 16  ;;  %v805_v13 = vor.u32 %v804_v50, %v801_v33  ;;  %v830_v10 = vshll.u32 %v2109_v48, 16 }
 0x1a8   : > { %v783_v61 = vsel %vm2999_vm14, %v778_v1, %v782_v63  ;;  %v836_v15 = vshll.u32 %v2110_v49, 16  ;;  %v792_v58 = vrot.slane %v791_v29, 4  ;;  %v824_v55 = vrot.slane %v822_v44, 5 }
 0x1a9   : > { %v2147_v36 = vcombine.low %v769_v57, %v783_v61  ;;  %v819_v22 = vor.u32 %v818_v51, %v815_v28  ;;  %v806_v0 = vrot.slane %v805_v13, 4  ;;  %v829_v46 = vrot.slane %v827_v17, 4 }
 0x1aa   : > { %v832_v34 = vrot.slane %v830_v10, 5  ;;  %v838_v39 = vrot.slane %v836_v15, 5  ;;  %v797_v11 = vsel %vm2999_vm14, %v792_v58, %v796_v31  ;;  %v841_v12 = vshrl.u32 %v3111_v19, 16 }
 0x1ab   : > { %2294 = vmatprep.mubr.msk.bf16.mxu0 %vm593_vm15, %v2147_v36  ;;  %v820_v37 = vrot.slane %v819_v22, 4  ;;  %v844_v1 = vshll.u32 %v3111_v19, 16  ;;  %v3262_v48 = vcombine.low %v783_v61, %v797_v11  ;;  %v811_v49 = vsel %vm2999_vm14, %v806_v0, %v810_v4  ;;  %v1429_v4 = vld [vmem:[#allocation8 + $0x14] sm:$0xf] }
 0x1ac   : > { %v833_v57 = vor.u32 %v832_v34, %v829_v46  ;;  %v850_v63 = vshll.u32 %v3115_v21, 16  ;;  %v2148_v33 = vcombine.low %v797_v11, %v811_v49  ;;  %v843_v58 = vrot.slane %v841_v12, 4  ;;  %v1781_v34 = vld [vmem:[#allocation8 + $0x20] sm:$0xf] }
 0x1ad   : > { %v825_v59 = vsel %vm2999_vm14, %v820_v37, %v824_v55  ;;  %v846_v31 = vrot.slane %v844_v1, 5  ;;  %2265 = vmatmul.mubr.msk.bf16.vlgmr.msra.gmra.mrb[8].mxu1 %vm593_vm15, %v3262_v48  ;;  %v2137_v29 = vcombine.low %v3103_v27, %v3075_v47  ;;  %v1286_v51 = vshrl.u32 %v3152_v8, 16 }
 0x1ae   : > { %v3271_v50 = vcombine.low %v811_v49, %v825_v59  ;;  %v834_v19 = vrot.slane %v833_v57, 4  ;;  %v852_v28 = vrot.slane %v850_v63, 5  ;;  %2283 = vmatpush3.bf16.msra.mxu1 %v3031_v5  ;;  %v1289_v44 = vshll.u32 %v3152_v8, 16 }
 0x1af   : > { %2295 = vmatmul.mubr.msk.bf16.vlgmr.msra.gmra.mrb[16].mxu0 %vm593_vm15, %v2148_v33  ;;  %v847_v21 = vor.u32 %v846_v31, %v843_v58  ;;  %v1295_v17 = vshll.u32 %v3156_v9, 16  ;;  %v2139_v47 = vcombine.low %v3121_v25, %v3183_v42  ;;  %v2140_v5 = vcombine.low %v3099_v14, %v3142_v62  ;;  %2348 = vmatprep.subr.msk.bf16.mxu1 %vm606_vm2, %v1429_v4 }
 0x1b0   : > { %2268 = vmatprep.mubr.msk.bf16.mxu1 %vm593_vm15, %v3271_v50  ;;  %v839_v61 = vsel %vm2999_vm14, %v834_v19, %v838_v39  ;;  %2313 = vmatpush3.bf16.msra.mxu0 %v3035_v6  ;;  %v2155_v27 = vrot.slane %v3152_v8, 9  ;;  %v1288_v15 = vrot.slane %v1286_v51, 4  ;;  %v1291_v36 = vrot.slane %v1289_v44, 5 }
 0x1b1   : > { %v2149_v13 = vcombine.low %v825_v59, %v839_v61  ;;  %v848_v10 = vrot.slane %v847_v21, 4  ;;  %2351 = vmatprep.subr.msk.bf16.mxu0 %vm606_vm2, %v1781_v34  ;;  %v2156_v39 = vcombine.low %v3178_v40, %v3148_v7  ;;  %v2158_v25 = vcombine.low %v3217_v26, %v3230_v38 }
 0x1b2   : > { %v1292_v14 = vor.u32 %v1291_v36, %v1288_v15  ;;  %v1297_v8 = vrot.slane %v1295_v17, 5  ;;  %v1427_v42 = vrot.slane %v3156_v9, 5  ;;  %v1448_v41 = vsel %vm606_vm2, %v1429_v4, 0  ;;  %v1668_v9 = vld [vmem:[#allocation8 + $0x1c] sm:$0xf] }
 0x1b3   : > { %2298 = vmatprep.mubr.msk.bf16.mxu0 %vm593_vm15, %v2149_v13  ;;  %v853_v6 = vsel %vm2999_vm14, %v848_v10, %v852_v28  ;;  %v3546_v46 = vcombine.low %v3047_v23, %v3061_v35  ;;  %v1787_v45 = vsel %vm606_vm2, %v1781_v34, 0  ;;  %v1674_v23 = vsel %vm606_vm2, %v1668_v9, 0 }
 0x1b4   : > { %v2116_v22 = vcombine.low %v839_v61, %v853_v6  ;;  %v1293_v55 = vrot.slane %v1292_v14, 4  ;;  %v1428_v0 = vsel %vm2993_vm13, %v2155_v27, %v1427_v42  ;;  %v3547_v35 = vcombine.low %v3161_v24, %v3200_v56 }
 0x1b5   : > { %v2159_v7 = vcombine.low %v3234_v43, %v1428_v0 }
 0x1b6   : > { %2269 = vmatmul.mubr.msk.bf16.gmra.mrb[12].mxu1 %vm593_vm15, %v2116_v22  ;;  %v1298_v40 = vsel %vm2999_vm14, %v1293_v55, %v1297_v8 }
 0x1b7   : > { %2284 = vmatprep.mubr.msk.bf16.mxu1 %vm593_vm15, %v2137_v29  ;;  %v2150_v26 = vcombine.low %v853_v6, %v1298_v40  ;;  %v2169_v38 = vcombine.low %v1298_v40, %v3009_v53  ;;  %v2164_v53 = vcombine.low %v3142_v62, %v2971_v20  ;;  %v2174_v20 = vcombine.low %v1428_v0, %v3005_v52 }
 0x1b9   : > { %2299 = vmatmul.mubr.msk.bf16.gmra.mrb[20].mxu0 %vm593_vm15, %v2150_v26 }
 0x1ba   : > { %2314 = vmatprep.mubr.msk.bf16.mxu0 %vm593_vm15, %v3107_v16 }
 0x1be   : > { %2285 = vmatmul.mubr.msk.bf16.vlgmr.msra.gmra.mrb[16].mxu1 %vm593_vm15, %v3546_v46 }
 0x1bf   : > { %2288 = vmatprep.mubr.msk.bf16.mxu1 %vm593_vm15, %v2139_v47  ;;  %2303 = vmatpush3.bf16.msra.mxu1 %v1448_v41 }
 0x1c0   : > { %2350 = vmatprep.subr.msk.bf16.mxu1 %vm606_vm2, %v1668_v9 }
 0x1c1   : > { %2315 = vmatmul.mubr.msk.bf16.vlgmr.msra.gmra.mrb[24].mxu0 %vm593_vm15, %v3171_v3 }
 0x1c2   : > { %2318 = vmatprep.mubr.msk.bf16.mxu0 %vm593_vm15, %v3196_v18  ;;  %2333 = vmatpush3.bf16.msra.mxu0 %v1787_v45 }
 0x1c6   : > { %2289 = vmatmul.mubr.msk.bf16.gmra.mrb[20].mxu1 %vm593_vm15, %v2140_v5 }
 0x1c7   : > { %2304 = vmatprep.mubr.msk.bf16.mxu1 %vm593_vm15, %v2156_v39 }
 0x1c9   : > { %2319 = vmatmul.mubr.msk.bf16.gmra.mrb[28].mxu0 %vm593_vm15, %v2164_v53 }
 0x1ca   : > { %2334 = vmatprep.mubr.msk.bf16.mxu0 %vm593_vm15, %v3167_v2 }
 0x1ce   : > { %2305 = vmatmul.mubr.msk.bf16.vlgmr.msra.gmra.mrb[24].mxu1 %vm593_vm15, %v3547_v35 }
 0x1cf   : > { %2308 = vmatprep.mubr.msk.bf16.mxu1 %vm593_vm15, %v2158_v25  ;;  %2323 = vmatpush3.bf16.msra.mxu1 %v1674_v23 }
 0x1d1   : > { %2335 = vmatmul.mubr.msk.bf16.vlgmr.msra.gmra.mrb[32].mxu0 %vm593_vm15, %v3226_v54 }
 0x1d2   : > { %2338 = vmatprep.mubr.msk.bf16.mxu0 %vm593_vm15, %v3241_v60 }
 0x1d6   : > { %2309 = vmatmul.mubr.msk.bf16.gmra.mrb[28].mxu1 %vm593_vm15, %v2159_v7 }
 0x1d7   : > { %2324 = vmatprep.mubr.msk.bf16.mxu1 %vm593_vm15, %v3262_v48 }
 0x1d9   : > { %2339 = vmatmul.mubr.msk.bf16.gmra.mrb[36].mxu0 %vm593_vm15, %v2174_v20 }
 0x1de   : > { %2325 = vmatmul.mubr.msk.bf16.vlgmr.msra.gmra.mrb[32].mxu1 %vm593_vm15, %v3271_v50 }
 0x1df   : > { %2328 = vmatprep.mubr.msk.bf16.mxu1 %vm593_vm15, %v2116_v22 }
 0x1e6   : > { %2329 = vmatmul.mubr.msk.bf16.gmra.mrb[36].mxu1 %vm593_vm15, %v2169_v38 }
 0x268   : > { %v2256_v16 = vpop.f32.mrb[0].mxu1 }
 0x269   : > { %687 = vrot.lane.b32.xlu1 %v2256_v16, %s2677_s24  ;;  %v644_v62 = vpop.f32.mrb[1].mxu1 }
 0x26a   : > { %683 = vrot.lane.b32.xlu0 %v644_v62, %s2677_s24  ;;  %v2257_v24 = vpop.f32.mrb[2].mxu1 }
 0x26b   : > { %v647_v2 = vpop.f32.mrb[3].mxu1 }
 0x26d   : > { %685 = vrot.lane.b32.xlu1 %v647_v2, %s2677_s24 }
 0x26e   : > { %689 = vrot.lane.b32.xlu0 %v2257_v24, %s2677_s24 }
 0x272   : > { %v2276_v52 = vpop.f32.mrb[8].mxu0  ;;  %v2260_v3 = vpop.f32.mrb[4].mxu1 }
 0x273   : > { %v1084_v18 = vpop.f32.mrb[9].mxu0  ;;  %1127 = vrot.lane.b32.xlu1 %v2276_v52, %s2677_s24  ;;  %v660_v56 = vpop.f32.mrb[5].mxu1 }
 0x274   : > { %v2277_v54 = vpop.f32.mrb[10].mxu0  ;;  %v2261_v43 = vpop.f32.mrb[6].mxu1 }
 0x275   : > { %v1087_v60 = vpop.f32.mrb[11].mxu0  ;;  %1129 = vrot.lane.b32.xlu0 %v2277_v54, %s2677_s24  ;;  %v663_v11 = vpop.f32.mrb[7].mxu1 }
 0x277   : > { %1123 = vrot.lane.b32.xlu1 %v1084_v18, %s2677_s24 }
 0x279   : > { %1125 = vrot.lane.b32.xlu0 %v1087_v60, %s2677_s24  ;;  %v458_v60 = vpop.permute.xlu0 %457 }
 0x27a   : > { %v2280_v37 = vpop.f32.mrb[12].mxu0 }
 0x27b   : > { %v1100_v12 = vpop.f32.mrb[13].mxu0  ;;  %695 = vrot.lane.b32.xlu1 %v2260_v3, %s2677_s24 }
 0x27c   : > { %v2281_v1 = vpop.f32.mrb[14].mxu0 }
 0x27d   : > { %v1103_v48 = vpop.f32.mrb[15].mxu0  ;;  %697 = vrot.lane.b32.xlu0 %v2261_v43, %s2677_s24 }
 0x27f   : > { %691 = vrot.lane.b32.xlu1 %v660_v56, %s2677_s24 }
 0x280   : > { %v2266_v49 = vpop.f32.mrb[8].mxu1 }
 0x281   : > { %693 = vrot.lane.b32.xlu0 %v663_v11, %s2677_s24  ;;  %v916_v57 = vpop.f32.mrb[9].mxu1  ;;  %v462_v11 = vadd.f32 %v2979_v30, %v458_v60 }
 0x282   : > { %v2296_v63 = vpop.f32.mrb[16].mxu0  ;;  %v2267_v59 = vpop.f32.mrb[10].mxu1 }
 0x283   : > { %v1354_v33 = vpop.f32.mrb[17].mxu0  ;;  %1135 = vrot.lane.b32.xlu1 %v2280_v37, %s2677_s24  ;;  %v919_v58 = vpop.f32.mrb[11].mxu1  ;;  %v460_v37 = vadd.f32 %v458_v60, %v2983_v32 }
 0x284   : > { %v2297_v31 = vpop.f32.mrb[18].mxu0 }
 0x285   : > { %v1357_v50 = vpop.f32.mrb[19].mxu0  ;;  %1137 = vrot.lane.b32.xlu0 %v2281_v1, %s2677_s24 }
 0x287   : > { %1131 = vrot.lane.b32.xlu1 %v1100_v12, %s2677_s24 }
 0x289   : > { %v2270_v19 = vpop.f32.mrb[12].mxu1  ;;  %1133 = vrot.lane.b32.xlu0 %v1103_v48, %s2677_s24 }
 0x28a   : > { %v932_v28 = vpop.f32.mrb[13].mxu1 }
 0x28b   : > { %v2271_v29 = vpop.f32.mrb[14].mxu1  ;;  %959 = vrot.lane.b32.xlu1 %v2266_v49, %s2677_s24 }
 0x28c   : > { %v935_v4 = vpop.f32.mrb[15].mxu1  ;;  %v2300_v34 = vpop.f32.mrb[20].mxu0 }
 0x28d   : > { %961 = vrot.lane.b32.xlu0 %v2267_v59, %s2677_s24  ;;  %v1370_v21 = vpop.f32.mrb[21].mxu0  ;;  %v3549_v59 = vld [vmem:[#allocation16_spill] sm:$0xff] }
 0x28e   : > { %v2301_v51 = vpop.f32.mrb[22].mxu0 }
 0x28f   : > { %955 = vrot.lane.b32.xlu1 %v916_v57, %s2677_s24  ;;  %v1373_v44 = vpop.f32.mrb[23].mxu0  ;;  %v3548_v57 = vld [vmem:[#allocation17_spill] sm:$0xff] }
 0x291   : > { %v2286_v17 = vpop.f32.mrb[16].mxu1  ;;  %957 = vrot.lane.b32.xlu0 %v919_v58, %s2677_s24 }
 0x292   : > { %v1211_v61 = vpop.f32.mrb[17].mxu1 }
 0x293   : > { %v2287_v47 = vpop.f32.mrb[18].mxu1  ;;  %1397 = vrot.lane.b32.xlu1 %v2296_v63, %s2677_s24  ;;  %v461_v63 = vadd.f32 %v458_v60, %v3548_v57 }
 0x294   : > { %v1214_v5 = vpop.f32.mrb[19].mxu1  ;;  %v2316_v27 = vpop.f32.mrb[24].mxu0 }
 0x295   : > { %1399 = vrot.lane.b32.xlu0 %v2297_v31, %s2677_s24  ;;  %v1597_v13 = vpop.f32.mrb[25].mxu0 }
 0x296   : > { %v2317_v10 = vpop.f32.mrb[26].mxu0 }
 0x297   : > { %1393 = vrot.lane.b32.xlu1 %v1354_v33, %s2677_s24  ;;  %v1600_v15 = vpop.f32.mrb[27].mxu0  ;;  %v463_v33 = vadd.f32 %v3549_v59, %v458_v60 }
 0x299   : > { %v2290_v36 = vpop.f32.mrb[20].mxu1  ;;  %1395 = vrot.lane.b32.xlu0 %v1357_v50, %s2677_s24 }
 0x29a   : > { %v1227_v39 = vpop.f32.mrb[21].mxu1 }
 0x29b   : > { %v2291_v25 = vpop.f32.mrb[22].mxu1  ;;  %967 = vrot.lane.b32.xlu1 %v2270_v19, %s2677_s24 }
 0x29c   : > { %v1230_v6 = vpop.f32.mrb[23].mxu1  ;;  %v2320_v14 = vpop.f32.mrb[28].mxu0 }
 0x29d   : > { %969 = vrot.lane.b32.xlu0 %v2271_v29, %s2677_s24  ;;  %v1613_v8 = vpop.f32.mrb[29].mxu0 }
 0x29e   : > { %v2321_v42 = vpop.f32.mrb[30].mxu0 }
 0x29f   : > { %963 = vrot.lane.b32.xlu1 %v932_v28, %s2677_s24  ;;  %v1616_v22 = vpop.f32.mrb[31].mxu0 }
 0x2a1   : > { %v2306_v55 = vpop.f32.mrb[24].mxu1  ;;  %965 = vrot.lane.b32.xlu0 %v935_v4, %s2677_s24  ;;  %v3550_v4 = vld [vmem:[#allocation18_spill] sm:$0xff] }
 0x2a2   : > { %v1484_v0 = vpop.f32.mrb[25].mxu1 }
 0x2a3   : > { %v2307_v7 = vpop.f32.mrb[26].mxu1  ;;  %1405 = vrot.lane.b32.xlu1 %v2300_v34, %s2677_s24  ;;  %v466_v34 = vadd.f32 %v3550_v4, %v458_v60 }
 0x2a4   : > { %v1487_v40 = vpop.f32.mrb[27].mxu1  ;;  %v2336_v26 = vpop.f32.mrb[32].mxu0 }
 0x2a5   : > { %1407 = vrot.lane.b32.xlu0 %v2301_v51, %s2677_s24  ;;  %v1823_v38 = vpop.f32.mrb[33].mxu0  ;;  %v3551_v51 = vld [vmem:[#allocation20_spill] sm:$0xff] }
 0x2a6   : > { %v2337_v41 = vpop.f32.mrb[34].mxu0 }
 0x2a7   : > { %1401 = vrot.lane.b32.xlu1 %v1370_v21, %s2677_s24  ;;  %v1826_v9 = vpop.f32.mrb[35].mxu0 }
 0x2a9   : > { %v2310_v46 = vpop.f32.mrb[28].mxu1  ;;  %1403 = vrot.lane.b32.xlu0 %v1373_v44, %s2677_s24  ;;  %v467_v44 = vadd.f32 %v3551_v51, %v458_v60 }
 0x2aa   : > { %v1500_v45 = vpop.f32.mrb[29].mxu1 }
 0x2ab   : > { %v2311_v53 = vpop.f32.mrb[30].mxu1  ;;  %1254 = vrot.lane.b32.xlu1 %v2286_v17, %s2677_s24 }
 0x2ac   : > { %v1503_v23 = vpop.f32.mrb[31].mxu1  ;;  %v3382_v35 = vpop.f32.mrb[36].mxu0 }
 0x2ad   : > { %1256 = vrot.lane.b32.xlu0 %v2287_v47, %s2677_s24  ;;  %v1839_v20 = vpop.f32.mrb[37].mxu0  ;;  %v3552_v47 = vld [vmem:[#allocation19_spill] sm:$0xff] }
 0x2ae   : > { %v3385_v16 = vpop.f32.mrb[38].mxu0 }
 0x2af   : > { %1250 = vrot.lane.b32.xlu1 %v1211_v61, %s2677_s24  ;;  %v1842_v62 = vpop.f32.mrb[39].mxu0 }
 0x2b1   : > { %v2326_v24 = vpop.f32.mrb[32].mxu1  ;;  %1252 = vrot.lane.b32.xlu0 %v1214_v5, %s2677_s24  ;;  %v464_v5 = vadd.f32 %v458_v60, %v3552_v47 }
 0x2b2   : > { %v1710_v2 = vpop.f32.mrb[33].mxu1 }
 0x2b3   : > { %v2327_v52 = vpop.f32.mrb[34].mxu1  ;;  %1640 = vrot.lane.b32.xlu1 %v2316_v27, %s2677_s24 }
 0x2b4   : > { %v1713_v3 = vpop.f32.mrb[35].mxu1 }
 0x2b5   : > { %1642 = vrot.lane.b32.xlu0 %v2317_v10, %s2677_s24  ;;  %v3553_v10 = vld [vmem:[#allocation21_spill] sm:$0xff] }
 0x2b7   : > { %1636 = vrot.lane.b32.xlu1 %v1597_v13, %s2677_s24 }
 0x2b9   : > { %v2330_v18 = vpop.f32.mrb[36].mxu1  ;;  %1638 = vrot.lane.b32.xlu0 %v1600_v15, %s2677_s24  ;;  %v465_v15 = vadd.f32 %v458_v60, %v3553_v10 }
 0x2ba   : > { %v1726_v56 = vpop.f32.mrb[37].mxu1 }
 0x2bb   : > { %v2331_v54 = vpop.f32.mrb[38].mxu1  ;;  %1262 = vrot.lane.b32.xlu1 %v2290_v36, %s2677_s24 }
 0x2bc   : > { %v1729_v43 = vpop.f32.mrb[39].mxu1 }
 0x2bd   : > { %1264 = vrot.lane.b32.xlu0 %v2291_v25, %s2677_s24 }
 0x2bf   : > { %1258 = vrot.lane.b32.xlu1 %v1227_v39, %s2677_s24 }
 0x2c1   : > { %1260 = vrot.lane.b32.xlu0 %v1230_v6, %s2677_s24 }
 0x2c3   : > { %1648 = vrot.lane.b32.xlu1 %v2320_v14, %s2677_s24 }
 0x2c5   : > { %1650 = vrot.lane.b32.xlu0 %v2321_v42, %s2677_s24 }
 0x2c7   : > { %1644 = vrot.lane.b32.xlu1 %v1613_v8, %s2677_s24 }
 0x2c9   : > { %1646 = vrot.lane.b32.xlu0 %v1616_v22, %s2677_s24 }
 0x2cb   : > { %1527 = vrot.lane.b32.xlu1 %v2306_v55, %s2677_s24 }
 0x2cd   : > { %1529 = vrot.lane.b32.xlu0 %v2307_v7, %s2677_s24 }
 0x2cf   : > { %1523 = vrot.lane.b32.xlu1 %v1484_v0, %s2677_s24 }
 0x2d1   : > { %1525 = vrot.lane.b32.xlu0 %v1487_v40, %s2677_s24 }
 0x2d3   : > { %1866 = vrot.lane.b32.xlu1 %v2336_v26, %s2677_s24 }
 0x2d5   : > { %1868 = vrot.lane.b32.xlu0 %v2337_v41, %s2677_s24 }
 0x2d7   : > { %1862 = vrot.lane.b32.xlu1 %v1823_v38, %s2677_s24 }
 0x2d9   : > { %1864 = vrot.lane.b32.xlu0 %v1826_v9, %s2677_s24 }
 0x2db   : > { %1535 = vrot.lane.b32.xlu1 %v2310_v46, %s2677_s24  ;;  %v688_v12 = vpop.permute.xlu1 %687 }
 0x2dc   : > { %v709_v1 = vadd.f32 %v688_v12, %v462_v11  ;;  %v684_v48 = vpop.permute.xlu0 %683 }
 0x2dd   : > { %1537 = vrot.lane.b32.xlu0 %v2311_v53, %s2677_s24  ;;  %v707_v49 = vadd.f32 %v684_v48, %v460_v37 }
 0x2df   : > { %1531 = vrot.lane.b32.xlu1 %v1500_v45, %s2677_s24  ;;  %v686_v58 = vpop.permute.xlu1 %685 }
 0x2e0   : > { %v708_v31 = vadd.f32 %v686_v58, %v461_v63  ;;  %v690_v50 = vpop.permute.xlu0 %689 }
 0x2e1   : > { %1533 = vrot.lane.b32.xlu0 %v1503_v23, %s2677_s24  ;;  %v710_v30 = vadd.f32 %v690_v50, %v463_v33 }
 0x2e3   : > { %1870 = vrot.lane.b32.xlu1 %v1839_v20, %s2677_s24 }
 0x2e5   : > { %1872 = vrot.lane.b32.xlu0 %v1842_v62, %s2677_s24  ;;  %v1128_v32 = vpop.permute.xlu1 %1127 }
 0x2e7   : > { %v1130_v19 = vpop.permute.xlu0 %1129  ;;  %1753 = vrot.lane.b32.xlu1 %v2326_v24, %s2677_s24 }
 0x2e9   : > { %1755 = vrot.lane.b32.xlu0 %v2327_v52, %s2677_s24  ;;  %v1124_v28 = vpop.permute.xlu1 %1123 }
 0x2eb   : > { %v1126_v29 = vpop.permute.xlu0 %1125  ;;  %1749 = vrot.lane.b32.xlu1 %v1710_v2, %s2677_s24 }
 0x2ed   : > { %1751 = vrot.lane.b32.xlu0 %v1713_v3, %s2677_s24  ;;  %v696_v21 = vpop.permute.xlu1 %695 }
 0x2ee   : > { %v713_v17 = vadd.f32 %v696_v21, %v466_v34 }
 0x2ef   : > { %v698_v61 = vpop.permute.xlu0 %697  ;;  %1761 = vrot.lane.b32.xlu1 %v2330_v18, %s2677_s24 }
 0x2f0   : > { %v714_v27 = vadd.f32 %v698_v61, %v467_v44 }
 0x2f1   : > { %1763 = vrot.lane.b32.xlu0 %v2331_v54, %s2677_s24  ;;  %v692_v13 = vpop.permute.xlu1 %691 }
 0x2f2   : > { %v711_v36 = vadd.f32 %v692_v13, %v464_v5 }
 0x2f3   : > { %v694_v39 = vpop.permute.xlu0 %693  ;;  %1757 = vrot.lane.b32.xlu1 %v1726_v56, %s2677_s24 }
 0x2f4   : > { %v712_v25 = vadd.f32 %v694_v39, %v465_v15 }
 0x2f5   : > { %1759 = vrot.lane.b32.xlu0 %v1729_v43, %s2677_s24  ;;  %v1136_v6 = vpop.permute.xlu1 %1135 }
 0x2f7   : > { %v1138_v14 = vpop.permute.xlu0 %1137  ;;  %1874 = vrot.lane.b32.xlu1 %v3382_v35, %s2677_s24 }
 0x2f9   : > { %1876 = vrot.lane.b32.xlu0 %v3385_v16, %s2677_s24  ;;  %v1132_v8 = vpop.permute.xlu1 %1131 }
 0x2fb   : > { %v1134_v42 = vpop.permute.xlu0 %1133 }
 0x2fd   : > { %v960_v22 = vpop.permute.xlu1 %959 }
 0x2fe   : > { %v981_v55 = vadd.f32 %v960_v22, %v709_v1 }
 0x2ff   : > { %v962_v0 = vpop.permute.xlu0 %961 }
 0x300   : > { %v982_v7 = vadd.f32 %v962_v0, %v710_v30  ;;  %v1149_v40 = vadd.f32 %v1128_v32, %v981_v55 }
 0x301   : > { %v956_v26 = vpop.permute.xlu1 %955 }
 0x302   : > { %v979_v38 = vadd.f32 %v956_v26, %v707_v49  ;;  %v1150_v41 = vadd.f32 %v1130_v19, %v982_v7 }
 0x303   : > { %v958_v9 = vpop.permute.xlu0 %957 }
 0x304   : > { %v980_v46 = vadd.f32 %v958_v9, %v708_v31  ;;  %v1147_v45 = vadd.f32 %v1124_v28, %v979_v38 }
 0x305   : > { %v1398_v53 = vpop.permute.xlu1 %1397 }
 0x306   : > { %v1148_v23 = vadd.f32 %v1126_v29, %v980_v46 }
 0x307   : > { %v1400_v20 = vpop.permute.xlu0 %1399 }
 0x309   : > { %v1394_v35 = vpop.permute.xlu1 %1393 }
 0x30b   : > { %v1396_v62 = vpop.permute.xlu0 %1395 }
 0x30d   : > { %v968_v24 = vpop.permute.xlu1 %967 }
 0x30e   : > { %v985_v16 = vadd.f32 %v968_v24, %v713_v17 }
 0x30f   : > { %v970_v2 = vpop.permute.xlu0 %969 }
 0x310   : > { %v986_v52 = vadd.f32 %v970_v2, %v714_v27  ;;  %v1153_v3 = vadd.f32 %v1136_v6, %v985_v16 }
 0x311   : > { %v964_v18 = vpop.permute.xlu1 %963 }
 0x312   : > { %v983_v56 = vadd.f32 %v964_v18, %v711_v36  ;;  %v1154_v54 = vadd.f32 %v1138_v14, %v986_v52 }
 0x313   : > { %v966_v43 = vpop.permute.xlu0 %965 }
 0x314   : > { %v984_v60 = vadd.f32 %v966_v43, %v712_v25  ;;  %v1151_v11 = vadd.f32 %v1132_v8, %v983_v56 }
 0x315   : > { %v1406_v37 = vpop.permute.xlu1 %1405 }
 0x316   : > { %v1152_v12 = vadd.f32 %v1134_v42, %v984_v60 }
 0x317   : > { %v1408_v1 = vpop.permute.xlu0 %1407 }
 0x319   : > { %v1402_v48 = vpop.permute.xlu1 %1401 }
 0x31b   : > { %v1404_v49 = vpop.permute.xlu0 %1403 }
 0x31d   : > { %v1255_v57 = vpop.permute.xlu1 %1254 }
 0x31e   : > { %v1276_v63 = vadd.f32 %v1255_v57, %v1149_v40 }
 0x31f   : > { %v1257_v59 = vpop.permute.xlu0 %1256 }
 0x320   : > { %v1277_v33 = vadd.f32 %v1257_v59, %v1150_v41  ;;  %v1419_v58 = vadd.f32 %v1398_v53, %v1276_v63 }
 0x321   : > { %v1251_v31 = vpop.permute.xlu1 %1250 }
 0x322   : > { %v1274_v50 = vadd.f32 %v1251_v31, %v1147_v45  ;;  %v1420_v30 = vadd.f32 %v1400_v20, %v1277_v33 }
 0x323   : > { %v1253_v32 = vpop.permute.xlu0 %1252 }
 0x324   : > { %v1275_v19 = vadd.f32 %v1253_v32, %v1148_v23  ;;  %v1417_v28 = vadd.f32 %v1394_v35, %v1274_v50 }
 0x325   : > { %v1641_v29 = vpop.permute.xlu1 %1640 }
 0x326   : > { %v1418_v4 = vadd.f32 %v1396_v62, %v1275_v19 }
 0x327   : > { %v1643_v34 = vpop.permute.xlu0 %1642 }
 0x329   : > { %v1637_v21 = vpop.permute.xlu1 %1636 }
 0x32b   : > { %v1639_v51 = vpop.permute.xlu0 %1638 }
 0x32d   : > { %v1263_v44 = vpop.permute.xlu1 %1262 }
 0x32e   : > { %v1280_v17 = vadd.f32 %v1263_v44, %v1153_v3 }
 0x32f   : > { %v1265_v61 = vpop.permute.xlu0 %1264 }
 0x330   : > { %v1281_v47 = vadd.f32 %v1265_v61, %v1154_v54  ;;  %v1423_v5 = vadd.f32 %v1406_v37, %v1280_v17 }
 0x331   : > { %v1259_v27 = vpop.permute.xlu1 %1258 }
 0x332   : > { %v1278_v13 = vadd.f32 %v1259_v27, %v1151_v11  ;;  %v1424_v10 = vadd.f32 %v1408_v1, %v1281_v47 }
 0x333   : > { %v1261_v15 = vpop.permute.xlu0 %1260 }
 0x334   : > { %v1279_v36 = vadd.f32 %v1261_v15, %v1152_v12  ;;  %v1421_v39 = vadd.f32 %v1402_v48, %v1278_v13 }
 0x335   : > { %v1649_v25 = vpop.permute.xlu1 %1648 }
 0x336   : > { %v1422_v6 = vadd.f32 %v1404_v49, %v1279_v36 }
 0x337   : > { %v1651_v14 = vpop.permute.xlu0 %1650 }
 0x339   : > { %v1645_v8 = vpop.permute.xlu1 %1644 }
 0x33b   : > { %v1647_v42 = vpop.permute.xlu0 %1646 }
 0x33d   : > { %v1528_v22 = vpop.permute.xlu1 %1527 }
 0x33e   : > { %v1549_v23 = vadd.f32 %v1528_v22, %v1419_v58 }
 0x33f   : > { %v1530_v55 = vpop.permute.xlu0 %1529 }
 0x340   : > { %v1550_v35 = vadd.f32 %v1530_v55, %v1420_v30  ;;  %v1662_v16 = vadd.f32 %v1641_v29, %v1549_v23 }
 0x341   : > { %v1524_v0 = vpop.permute.xlu1 %1523 }
 0x342   : > { %v1547_v24 = vadd.f32 %v1524_v0, %v1417_v28  ;;  %v1663_v18 = vadd.f32 %v1643_v34, %v1550_v35 }
 0x343   : > { %v1526_v7 = vpop.permute.xlu0 %1525 }
 0x344   : > { %v1548_v52 = vadd.f32 %v1526_v7, %v1418_v4  ;;  %v1660_v60 = vadd.f32 %v1637_v21, %v1547_v24 }
 0x345   : > { %v1867_v40 = vpop.permute.xlu1 %1866 }
 0x346   : > { %v1661_v1 = vadd.f32 %v1639_v51, %v1548_v52 }
 0x347   : > { %v1869_v26 = vpop.permute.xlu0 %1868 }
 0x349   : > { %v1863_v38 = vpop.permute.xlu1 %1862 }
 0x34b   : > { %v1865_v41 = vpop.permute.xlu0 %1864 }
 0x34d   : > { %v1536_v9 = vpop.permute.xlu1 %1535 }
 0x34e   : > { %v1553_v50 = vadd.f32 %v1536_v9, %v1423_v5 }
 0x34f   : > { %v1538_v46 = vpop.permute.xlu0 %1537 }
 0x350   : > { %v1554_v19 = vadd.f32 %v1538_v46, %v1424_v10  ;;  %v1666_v34 = vadd.f32 %v1649_v25, %v1553_v50 }
 0x351   : > { %v1532_v45 = vpop.permute.xlu1 %1531 }
 0x352   : > { %v1551_v49 = vadd.f32 %v1532_v45, %v1421_v39  ;;  %v1667_v61 = vadd.f32 %v1651_v14, %v1554_v19 }
 0x353   : > { %v1534_v53 = vpop.permute.xlu0 %1533 }
 0x354   : > { %v1552_v33 = vadd.f32 %v1534_v53, %v1422_v6  ;;  %v1664_v30 = vadd.f32 %v1645_v8, %v1551_v49 }
 0x355   : > { %v1871_v20 = vpop.permute.xlu1 %1870 }
 0x356   : > { %v1665_v29 = vadd.f32 %v1647_v42, %v1552_v33 }
 0x357   : > { %v1873_v62 = vpop.permute.xlu0 %1872 }
 0x359   : > { %v1754_v2 = vpop.permute.xlu1 %1753 }
 0x35a   : > { %v1775_v3 = vadd.f32 %v1754_v2, %v1662_v16 }
 0x35b   : > { %v1756_v56 = vpop.permute.xlu0 %1755 }
 0x35c   : > { %v1888_v54 = vadd.f32 %v1867_v40, %v1775_v3  ;;  %v1776_v43 = vadd.f32 %v1756_v56, %v1663_v18 }
 0x35d   : > { %v1750_v11 = vpop.permute.xlu1 %1749 }
 0x35e   : > { %v1889_v37 = vadd.f32 %v1869_v26, %v1776_v43  ;;  %v1773_v12 = vadd.f32 %v1750_v11, %v1660_v60  ;;  %1906 = vrot.lane.b32.xlu1 %v1888_v54, %s2679_s26 }
 0x35f   : > { %v1752_v48 = vpop.permute.xlu0 %1751 }
 0x360   : > { %v1886_v57 = vadd.f32 %v1863_v38, %v1773_v12  ;;  %v1774_v63 = vadd.f32 %v1752_v48, %v1661_v1  ;;  %1908 = vrot.lane.b32.xlu0 %v1889_v37, %s2679_s26 }
 0x361   : > { %v1762_v59 = vpop.permute.xlu1 %1761 }
 0x362   : > { %v1887_v58 = vadd.f32 %v1865_v41, %v1774_v63  ;;  %1902 = vrot.lane.b32.xlu1 %v1886_v57, %s2679_s26  ;;  %v1779_v17 = vadd.f32 %v1762_v59, %v1666_v34 }
 0x363   : > { %v1764_v31 = vpop.permute.xlu0 %1763 }
 0x364   : > { %1904 = vrot.lane.b32.xlu0 %v1887_v58, %s2679_s26  ;;  %v1780_v5 = vadd.f32 %v1764_v31, %v1667_v61 }
 0x365   : > { %v1758_v32 = vpop.permute.xlu1 %1757 }
 0x366   : > { %v1777_v28 = vadd.f32 %v1758_v32, %v1664_v30 }
 0x367   : > { %v1760_v4 = vpop.permute.xlu0 %1759 }
 0x368   : > { %v1890_v21 = vadd.f32 %v1871_v20, %v1777_v28  ;;  %v1778_v51 = vadd.f32 %v1760_v4, %v1665_v29 }
 0x369   : > { %v1875_v44 = vpop.permute.xlu1 %1874 }
 0x36a   : > { %v1891_v47 = vadd.f32 %v1873_v62, %v1778_v51  ;;  %1910 = vrot.lane.b32.xlu1 %v1890_v21, %s2679_s26  ;;  %v1892_v13 = vadd.f32 %v1875_v44, %v1779_v17 }
 0x36b   : > { %v1877_v27 = vpop.permute.xlu0 %1876 }
 0x36c   : > { %1912 = vrot.lane.b32.xlu0 %v1891_v47, %s2679_s26  ;;  %v1893_v15 = vadd.f32 %v1877_v27, %v1780_v5 }
 0x36e   : > { %1914 = vrot.lane.b32.xlu1 %v1892_v13, %s2679_s26 }
 0x370   : > { %1916 = vrot.lane.b32.xlu0 %v1893_v15, %s2679_s26 }
 0x3d0   : > { %v1907_v10 = vpop.permute.xlu1 %1906 }
 0x3d1   : > { %1928 = vst.msk [vmem:[%s296_s27 + $0x10] sm:$0xff] %vm593_vm15, %v1907_v10 }
 0x3d2   : > { %v1909_v36 = vpop.permute.xlu0 %1908 }
 0x3d3   : > { %1929 = vst.msk [vmem:[%s296_s27 + $0x18] sm:$0xff] %vm593_vm15, %v1909_v36 }
 0x3d4   : > { %v1903_v39 = vpop.permute.xlu1 %1902 }
 0x3d5   : > { %1926 = vst.msk [vmem:[%s296_s27] sm:$0xff] %vm593_vm15, %v1903_v39 }
 0x3d6   : > { %v1905_v25 = vpop.permute.xlu0 %1904 }
 0x3d7   : > { %1927 = vst.msk [vmem:[%s296_s27 + $0x8] sm:$0xff] %vm593_vm15, %v1905_v25 }
 0x3dc   : > { %v1911_v6 = vpop.permute.xlu1 %1910 }
 0x3dd   : > { %1930 = vst.msk [vmem:[%s296_s27 + $0x20] sm:$0xff] %vm593_vm15, %v1911_v6 }
 0x3de   : > { %v1913_v14 = vpop.permute.xlu0 %1912 }
 0x3df   : > { %1931 = vst.msk [vmem:[%s296_s27 + $0x28] sm:$0xff] %vm593_vm15, %v1913_v14 }
 0x3e0   : > { %v1915_v8 = vpop.permute.xlu1 %1914 }
 0x3e1   : > { %1932 = vst.msk [vmem:[%s296_s27 + $0x30] sm:$0xff] %vm593_vm15, %v1915_v8 }
 0x3e2   : > { %v1917_v42 = vpop.permute.xlu0 %1916 }
 0x3e3   : > { %1933 = vst.msk [vmem:[%s296_s27 + $0x38] sm:$0xff] %vm593_vm15, %v1917_v42 }
 0x3e4   : > { %2607 = shalt.err (!%p2604_p13)
}
 0x3e5   : > { %s2608_s13 = scalar_lea.hbm %s3457_s11, 1024  ;;  %s2612_s23 = scalar_lea.hbm %s3508_s5, 2048 }
 0x3e6   : > { %p2609_p9 = scmp.ne.s32.totalorder %s3457_s11, %s2608_s13  ;;  %p2613_p11 = scmp.lt.u32.totalorder %s3457_s11, %s3508_s5 }
 0x3e7   : > { %p2614_p4 = scmp.lt.u32.totalorder %s2612_s23, %s2608_s13  ;;  %p2616_p3 = scmp.lt.u32.totalorder %s2608_s13, %s3457_s11 }
 0x3e8   : > { %p2610_p0 = pnand %p2609_p9, %p2877_p10 }
 0x3e9   : > { %p2615_p8 = por %p2614_p4, %p2613_p11 }
 0x3ea   : > { %p2611_p6 = pneg %p2610_p0 }
 0x3eb   : > { %p2617_p5 = por %p2616_p3, %p2615_p8 }
 0x3ed   : > { %p2618_p7 = pnand %p2617_p5, %p2611_p6 }
 0x3ef   : > { %2621 = shalt.err (!%p2618_p7)
}
 0x3f0   : > { %s2681_s28 = smov 128  }
 0x3f1   : > { %2370 = dma.vmem_to_hbm [thread:$0]  (%p2877_p10), %s3451_s16, 1024, %s3457_s11, %s1935_s8, %s2681_s28, %s2681_s28, %s2677_s24  }
 0x3f2 PF: > { %s1963_s17 = sand.u32 1, %s2656_s18   ;;  %p3554_p12 = scmp.ne.s32.totalorder %s3519_s25, 0 }
 0x3f3   : > { %p3555_p1 = scmp.ge.s32.totalorder %s2668_s21, 2  ;;  %s1964_s22 = scalar_lea.sflag [#allocation4], %s1963_s17 }
 0x3f5   : > { %p2390_p2 = pnand %p3555_p1, %p3554_p12 }
 0x3f7   : > { %2651 = dma.done.wait (!%p2390_p2), %s1964_s22, 1024  }
 0x3f8   : > { %2653 = vsyncadd (!%p2390_p2), %s1964_s22, 4294966272  ;;  %p20_p13 = scmp.ge.s32.totalorder %s2867_s14, 4   ;;  %s3556_s18 = smov %s2660_s19 }
 0x3f9   : > { %s3557_s19 = smov %s2664_s20  ;;  %s3558_s20 = smov %s2883_s10 }
 0x3fa   : > { %s3559_s21 = smov %s2867_s14  ;;  %22 = sbr.rel (!%p20_p13) target bundleno = 7 (0x7), region = 101 }
 0x401   :  { %1969 = vsyncpa [#allocation3], 1 }
 0x402   :  { %1971 = vsyncpa [#allocation3 + $0x1], 1 }
 0x403   :  { %1972 = vsyncpa [#allocation6], 1 }
 0x404   :  { %1973 = vsyncpa [#allocation9], 1 }
 0x405   :  { %1974 = vsyncpa [#allocation4], 1 }
 0x406   :  { %1976 = vsyncpa [#allocation4 + $0x1], 1 }

</bundles_post_ra>
